<compile_context>
chip_gen: v6e
topology: v6e:2x2x1
jax: 0.10.0
libtpu: 0.0.40
codegen_flags: <defaults>
</compile_context>

<pallas_src>
import functools

import jax
import jax.numpy as jnp
from jax.experimental import pallas as pl
from jax.experimental.pallas import tpu as pltpu

N_CTX = 10  # conv_concat = conv1x1(10 * idf, idf)  =>  len(contexts) == 10


def _round_up(x, m):
    return ((x + m - 1) // m) * m


def _multi_attention_kernel(tgt_ref, ctx_ref, wctx_ref, vcat_ref, blk_ref,
                            prm_ref, out_ref, *, compute_dtype, exp_in_bf16,
                            eps):
    # tgt_ref : (1, TQ, idf)  f32  query tile of targetT (residual/LN stay f32)
    # ctx_ref : (1, cdf, NS)  cdt  contexts concatenated along sourceL
    # wctx_ref: (idf, cdf)    cdt  conv_context weight
    # vcat_ref: (1, NS, idf)  cdt  fused V: V_cat[i*L+l, o] = sum_c ctx_i[c,l]*(wcc_i@w_ctx)[o,c]
    # blk_ref : (NS, NS)      f32  block-diagonal ones (per-context softmax segments)
    # prm_ref : (3, idf)      f32  [conv_b bias; LN gamma; LN beta]
    # out_ref : (1, TQ, idf)  f32
    tgt = tgt_ref[0]                                        # (TQ, idf) f32
    prm = prm_ref[...]
    wb, gamma, beta = prm[0:1], prm[1:2], prm[2:3]          # (1, idf) each

    # --- logits: hoisted Q projection + one lane-dense matmul ---------------
    q = jnp.dot(tgt.astype(compute_dtype), wctx_ref[...],
                preferred_element_type=jnp.float32)          # (TQ, cdf)
    logits = jnp.dot(q.astype(compute_dtype), ctx_ref[0],
                     preferred_element_type=jnp.float32)     # (TQ, NS)

    # --- per-context softmax, no per-context loop ----------------------------
    m = jnp.max(logits, axis=-1, keepdims=True)              # global row max: valid shift
    z = logits - m
    if exp_in_bf16:   # enable on v6e / v7x only (bf16 EUP); keep f32 on v5e
        p = jnp.exp(z.astype(jnp.bfloat16)).astype(jnp.float32)
    else:
        p = jnp.exp(z)                                        # (TQ, NS) f32
    # block-replicated denominators with ONE small matmul (p @ block-diag-ones)
    denom = jnp.dot(p, blk_ref[...], preferred_element_type=jnp.float32)
    pn = p / denom                                            # exact divide (no approx recip)

    # --- fused AV + output projection: ONE (TQ,NS)@(NS,idf) matmul -----------
    acc = jnp.dot(pn.astype(compute_dtype), vcat_ref[0],
                  preferred_element_type=jnp.float32)         # (TQ, idf)

    # --- bias (conv_b on ones), ReLU, residual, LayerNorm (single-pass stats)
    x = jnp.maximum(acc + wb, 0.0) + tgt
    idf = x.shape[-1]
    s1 = jnp.sum(x, axis=-1, keepdims=True)
    s2 = jnp.sum(x * x, axis=-1, keepdims=True)
    mean = s1 * (1.0 / idf)
    var = jnp.maximum(s2 * (1.0 / idf) - mean * mean, 0.0)
    # eps defaults to 0 to match nn.LayerNorm(idf, eps=0); zero-variance rows
    # would be inf in PyTorch too.
    xn = (x - mean) * jax.lax.rsqrt(var + eps)
    out_ref[0] = xn * gamma + beta


def multi_attention(input_nchw, contexts, w_ctx, w_cc, w_b, gamma, beta, *,
                    q_tile=1024, compute_dtype=jnp.bfloat16,
                    exp_in_bf16=False, eps=0.0, vmem_limit_bytes=None):
    """contexts: list of N_CTX arrays, each (B, cdf, sourceL)."""
    assert len(contexts) == N_CTX
    B, idf, ih, iw = input_nchw.shape
    queryL = ih * iw
    cdf, sourceL = contexts[0].shape[1], contexts[0].shape[2]
    ns = N_CTX * sourceL

    # ---- layout prep + weight/V fusion in plain JAX (tiny, once per call) ----
    targetT = jnp.transpose(input_nchw.reshape(B, idf, queryL),
                            (0, 2, 1)).astype(jnp.float32)            # (B, queryL, idf)
    ctx_cat = jnp.concatenate([c.astype(jnp.float32) for c in contexts],
                              axis=-1)                                 # (B, cdf, NS)

    # W_out[i] = (w_cc[:, i*idf:(i+1)*idf] @ w_ctx)^T : (N_CTX, cdf, idf)
    wcc3 = w_cc.astype(jnp.float32).reshape(idf, N_CTX, idf)           # [o, i, d]
    wfused = jnp.einsum("oid,dc->ico", wcc3, w_ctx.astype(jnp.float32))
    # V_cat[b, i*L+l, o] = sum_c ctx_i[b, c, l] * W_out[i][c, o]
    ctx4 = ctx_cat.reshape(B, cdf, N_CTX, sourceL)
    vcat = jnp.einsum("bcil,ico->bilo", ctx4, wfused).reshape(B, ns, idf)

    # block-diagonal ones for per-context softmax denominators
    blk = (jnp.arange(ns)[:, None] // sourceL ==
           jnp.arange(ns)[None, :] // sourceL).astype(jnp.float32)     # (NS, NS)

    prm = jnp.stack([w_b.reshape(idf), gamma.reshape(idf),
                     beta.reshape(idf)]).astype(jnp.float32)            # (3, idf)

    # ---- queryL padding / tiling (no divisibility assert) -------------------
    padded = _round_up(queryL, 8)
    tq = _round_up(min(q_tile, padded), 8)
    padded = _round_up(padded, tq)
    nqt = padded // tq
    if padded != queryL:
        targetT = jnp.pad(targetT, ((0, 0), (0, padded - queryL), (0, 0)))

    kernel = functools.partial(_multi_attention_kernel,
                               compute_dtype=compute_dtype,
                               exp_in_bf16=exp_in_bf16, eps=eps)

    out = pl.pallas_call(
        kernel,
        out_shape=jax.ShapeDtypeStruct((B, padded, idf), jnp.float32),
        grid=(B, nqt),
        in_specs=[
            pl.BlockSpec((1, tq, idf), lambda b, qi: (b, qi, 0)),
            pl.BlockSpec((1, cdf, ns), lambda b, qi: (b, 0, 0)),
            pl.BlockSpec((idf, cdf), lambda b, qi: (0, 0)),
            pl.BlockSpec((1, ns, idf), lambda b, qi: (b, 0, 0)),
            pl.BlockSpec((ns, ns), lambda b, qi: (0, 0)),
            pl.BlockSpec((3, idf), lambda b, qi: (0, 0)),
        ],
        out_specs=pl.BlockSpec((1, tq, idf), lambda b, qi: (b, qi, 0)),
        compiler_params=pltpu.CompilerParams(
            # Both axes parallel: v7x can shard its 2 TensorCores over batch
            # and/or query tiles (near-zero effect on single-TC v5e/v6e).
            dimension_semantics=("parallel", "parallel"),
            vmem_limit_bytes=vmem_limit_bytes),
    )(targetT,
      ctx_cat.astype(compute_dtype),
      w_ctx.astype(compute_dtype),
      vcat.astype(compute_dtype),
      blk, prm)
    return out[:, :queryL, :]


def multi_attention_ref(input_nchw, contexts, w_ctx, w_cc, w_b, gamma, beta):
    """Pure-JAX reference mirroring the PyTorch forward."""
    B, idf, ih, iw = input_nchw.shape
    queryL = ih * iw
    targetT = jnp.transpose(input_nchw.reshape(B, idf, queryL), (0, 2, 1))
    attns = []
    for i in range(N_CTX):
        src = jnp.einsum("oc,bcl->bol", w_ctx, contexts[i])     # conv_context
        w = jnp.einsum("bqd,bdl->bql", targetT, src)            # bmm
        w = jax.nn.softmax(w, axis=-1)
        attns.append(jnp.einsum("bql,bld->bqd", w, jnp.transpose(src, (0, 2, 1))))
    attn_concat = jnp.concatenate(attns, axis=-1)               # (B, queryL, 10*idf)
    x = jnp.einsum("bqc,oc->bqo", attn_concat, w_cc) + w_b[None, None, :]
    x = jnp.maximum(x, 0.0)
    x = x + targetT
    mean = jnp.mean(x, axis=-1, keepdims=True)
    var = jnp.mean((x - mean) ** 2, axis=-1, keepdims=True)
    return (x - mean) / jnp.sqrt(var) * gamma[None, None, :] + beta[None, None, :]


if __name__ == "__main__":
    # Make the f32 reference/check deterministic & tight on TPU (DEFAULT
    # precision would run the reference einsums with bf16 operand passes and
    # swamp the tolerance — this was the rev-2 failure).
    jax.config.update("jax_default_matmul_precision", "highest")

    B, idf, cdf = 2, 32, 16
    ih = iw = 8
    sourceL = 8

    key = jax.random.PRNGKey(0)
    keys = jax.random.split(key, 4 + N_CTX)
    x = jax.random.normal(keys[0], (B, idf, ih, iw), dtype=jnp.float32)
    contexts = [jax.random.normal(keys[4 + i], (B, cdf, sourceL), dtype=jnp.float32)
                for i in range(N_CTX)]

    w_ctx = 0.1 * jax.random.normal(keys[1], (idf, cdf), dtype=jnp.float32)          # conv_context
    w_cc = 0.1 * jax.random.normal(keys[2], (idf, N_CTX * idf), dtype=jnp.float32)   # conv_concat
    w_b = 0.1 * jax.random.normal(keys[3], (idf,), dtype=jnp.float32)                # conv_b
    gamma = jnp.ones((idf,), dtype=jnp.float32)                                      # LN weight
    beta = jnp.zeros((idf,), dtype=jnp.float32)                                      # LN bias

    ref = multi_attention_ref(x, contexts, w_ctx, w_cc, w_b, gamma, beta)

    # 1) Structural check: f32 operands, tight tolerance.
    out_f32 = jax.block_until_ready(
        multi_attention(x, contexts, w_ctx, w_cc, w_b, gamma, beta,
                        compute_dtype=jnp.float32))
    if not jnp.allclose(out_f32, ref, atol=5e-3, rtol=5e-3):
        err = float(jnp.max(jnp.abs(out_f32 - ref)))
        raise AssertionError(f"f32 Pallas kernel does not match reference (max|err|={err:.3e})")

    # 2) Production path: bf16 MXU operands, f32 accumulation.  Tolerance is
    #    sized for bf16 operand rounding of O(1) LayerNorm-scale outputs;
    #    structural errors would be O(0.5-1) and are caught by check (1).
    out_bf16 = jax.block_until_ready(
        multi_attention(x, contexts, w_ctx, w_cc, w_b, gamma, beta))
    if not jnp.allclose(out_bf16, ref, atol=1e-1, rtol=1e-1):
        err = float(jnp.max(jnp.abs(out_bf16 - ref)))
        raise AssertionError(f"bf16 Pallas kernel deviates from reference (max|err|={err:.3e})")

    print("KERNEL_OK")
</pallas_src>

<mosaic_0001>
module attributes {stable_mosaic.version = 11 : i64} {
  func.func @_multi_attention_kernel(%arg0: i32, %arg1: i32, %arg2: memref<1x64x32xf32, #tpu.memory_space<vmem>>, %arg3: memref<1x16x80xf32, #tpu.memory_space<vmem>>, %arg4: memref<32x16xf32, #tpu.memory_space<vmem>>, %arg5: memref<1x80x32xf32, #tpu.memory_space<vmem>>, %arg6: memref<80x80xf32, #tpu.memory_space<vmem>>, %arg7: memref<3x32xf32, #tpu.memory_space<vmem>>, %arg8: memref<1x64x32xf32, #tpu.memory_space<vmem>>) attributes {dimension_semantics = [#tpu.dimension_semantics<parallel>, #tpu.dimension_semantics<parallel>], iteration_bounds = array<i64: 2, 1>, scalar_prefetch = 0 : i64, scratch_operands = 0 : i64, tpu.core_type = #tpu.core_type<tc>, window_params = [{transform_indices = @transform_0, window_bounds = array<i64: 1, 64, 32>}, {transform_indices = @transform_1, window_bounds = array<i64: 1, 16, 80>}, {pipeline_mode = #tpu.pipeline_mode<synchronous>, transform_indices = @transform_2, window_bounds = array<i64: 32, 16>}, {transform_indices = @transform_3, window_bounds = array<i64: 1, 80, 32>}, {pipeline_mode = #tpu.pipeline_mode<synchronous>, transform_indices = @transform_4, window_bounds = array<i64: 80, 80>}, {pipeline_mode = #tpu.pipeline_mode<synchronous>, transform_indices = @transform_5, window_bounds = array<i64: 3, 32>}, {transform_indices = @transform_6, window_bounds = array<i64: 1, 64, 32>}]} {
    %c0 = arith.constant 0 : index
    %c0_0 = arith.constant 0 : index
    %c0_1 = arith.constant 0 : index
    %0 = vector.load %arg2[%c0, %c0_0, %c0_1] : memref<1x64x32xf32, #tpu.memory_space<vmem>>, vector<1x64x32xf32>
    %1 = vector.shape_cast %0 : vector<1x64x32xf32> to vector<64x32xf32>
    %c0_2 = arith.constant 0 : index
    %c0_3 = arith.constant 0 : index
    %2 = vector.load %arg7[%c0_2, %c0_3] : memref<3x32xf32, #tpu.memory_space<vmem>>, vector<3x32xf32>
    %3 = vector.extract_strided_slice %2 {offsets = [0, 0], sizes = [1, 32], strides = [1, 1]} : vector<3x32xf32> to vector<1x32xf32>
    %4 = vector.extract_strided_slice %2 {offsets = [1, 0], sizes = [1, 32], strides = [1, 1]} : vector<3x32xf32> to vector<1x32xf32>
    %5 = vector.extract_strided_slice %2 {offsets = [2, 0], sizes = [1, 32], strides = [1, 1]} : vector<3x32xf32> to vector<1x32xf32>
    %c0_4 = arith.constant 0 : index
    %c0_5 = arith.constant 0 : index
    %6 = vector.load %arg4[%c0_4, %c0_5] : memref<32x16xf32, #tpu.memory_space<vmem>>, vector<32x16xf32>
    %cst = arith.constant dense<0.000000e+00> : vector<64x16xf32>
    %7 = tpu.matmul %1, %6, %cst {dimension_numbers = #tpu.dot_dimension_numbers<[1], [0], [0], [1], [0, 0, 1, 1], [], []>, precision = #tpu.contract_precision<fp32>} : vector<64x32xf32>, vector<32x16xf32>, vector<64x16xf32> -> vector<64x16xf32>
    %c0_6 = arith.constant 0 : index
    %c0_7 = arith.constant 0 : index
    %c0_8 = arith.constant 0 : index
    %8 = vector.load %arg3[%c0_6, %c0_7, %c0_8] : memref<1x16x80xf32, #tpu.memory_space<vmem>>, vector<1x16x80xf32>
    %9 = vector.shape_cast %8 : vector<1x16x80xf32> to vector<16x80xf32>
    %cst_9 = arith.constant dense<0.000000e+00> : vector<64x80xf32>
    %10 = tpu.matmul %7, %9, %cst_9 {dimension_numbers = #tpu.dot_dimension_numbers<[1], [0], [0], [1], [0, 0, 1, 1], [], []>, precision = #tpu.contract_precision<fp32>} : vector<64x16xf32>, vector<16x80xf32>, vector<64x80xf32> -> vector<64x80xf32>
    %cst_10 = arith.constant dense<0xFF800000> : vector<64xf32>
    %11 = vector.multi_reduction <maximumf>, %10, %cst_10 [1] : vector<64x80xf32> to vector<64xf32>
    %12 = vector.shape_cast %11 : vector<64xf32> to vector<64x1xf32>
    %13 = vector.broadcast %12 : vector<64x1xf32> to vector<64x80xf32>
    %14 = arith.subf %10, %13 : vector<64x80xf32>
    %15 = math.exp %14 : vector<64x80xf32>
    %c0_11 = arith.constant 0 : index
    %c0_12 = arith.constant 0 : index
    %16 = vector.load %arg6[%c0_11, %c0_12] : memref<80x80xf32, #tpu.memory_space<vmem>>, vector<80x80xf32>
    %cst_13 = arith.constant dense<0.000000e+00> : vector<64x80xf32>
    %17 = tpu.matmul %15, %16, %cst_13 {dimension_numbers = #tpu.dot_dimension_numbers<[1], [0], [0], [1], [0, 0, 1, 1], [], []>, precision = #tpu.contract_precision<fp32>} : vector<64x80xf32>, vector<80x80xf32>, vector<64x80xf32> -> vector<64x80xf32>
    %18 = arith.divf %15, %17 : vector<64x80xf32>
    %c0_14 = arith.constant 0 : index
    %c0_15 = arith.constant 0 : index
    %c0_16 = arith.constant 0 : index
    %19 = vector.load %arg5[%c0_14, %c0_15, %c0_16] : memref<1x80x32xf32, #tpu.memory_space<vmem>>, vector<1x80x32xf32>
    %20 = vector.shape_cast %19 : vector<1x80x32xf32> to vector<80x32xf32>
    %cst_17 = arith.constant dense<0.000000e+00> : vector<64x32xf32>
    %21 = tpu.matmul %18, %20, %cst_17 {dimension_numbers = #tpu.dot_dimension_numbers<[1], [0], [0], [1], [0, 0, 1, 1], [], []>, precision = #tpu.contract_precision<fp32>} : vector<64x80xf32>, vector<80x32xf32>, vector<64x32xf32> -> vector<64x32xf32>
    %22 = vector.broadcast %3 : vector<1x32xf32> to vector<64x32xf32>
    %23 = arith.addf %21, %22 : vector<64x32xf32>
    %cst_18 = arith.constant 0.000000e+00 : f32
    %24 = vector.broadcast %cst_18 : f32 to vector<64x32xf32>
    %25 = arith.maximumf %23, %24 : vector<64x32xf32>
    %26 = arith.addf %25, %1 : vector<64x32xf32>
    %cst_19 = arith.constant dense<0.000000e+00> : vector<64xf32>
    %27 = vector.multi_reduction <add>, %26, %cst_19 [1] : vector<64x32xf32> to vector<64xf32>
    %28 = vector.shape_cast %27 : vector<64xf32> to vector<64x1xf32>
    %29 = arith.mulf %26, %26 : vector<64x32xf32>
    %cst_20 = arith.constant dense<0.000000e+00> : vector<64xf32>
    %30 = vector.multi_reduction <add>, %29, %cst_20 [1] : vector<64x32xf32> to vector<64xf32>
    %31 = vector.shape_cast %30 : vector<64xf32> to vector<64x1xf32>
    %cst_21 = arith.constant 3.125000e-02 : f32
    %32 = vector.broadcast %cst_21 : f32 to vector<64x1xf32>
    %33 = arith.mulf %28, %32 : vector<64x1xf32>
    %cst_22 = arith.constant 3.125000e-02 : f32
    %34 = vector.broadcast %cst_22 : f32 to vector<64x1xf32>
    %35 = arith.mulf %31, %34 : vector<64x1xf32>
    %36 = arith.mulf %33, %33 : vector<64x1xf32>
    %37 = arith.subf %35, %36 : vector<64x1xf32>
    %cst_23 = arith.constant 0.000000e+00 : f32
    %38 = vector.broadcast %cst_23 : f32 to vector<64x1xf32>
    %39 = arith.maximumf %37, %38 : vector<64x1xf32>
    %40 = vector.broadcast %33 : vector<64x1xf32> to vector<64x32xf32>
    %41 = arith.subf %26, %40 : vector<64x32xf32>
    %cst_24 = arith.constant 0.000000e+00 : f32
    %42 = vector.broadcast %cst_24 : f32 to vector<64x1xf32>
    %43 = arith.addf %39, %42 : vector<64x1xf32>
    %44 = math.rsqrt %43 : vector<64x1xf32>
    %45 = vector.broadcast %44 : vector<64x1xf32> to vector<64x32xf32>
    %46 = arith.mulf %41, %45 : vector<64x32xf32>
    %47 = vector.broadcast %4 : vector<1x32xf32> to vector<64x32xf32>
    %48 = arith.mulf %46, %47 : vector<64x32xf32>
    %49 = vector.broadcast %5 : vector<1x32xf32> to vector<64x32xf32>
    %50 = arith.addf %48, %49 : vector<64x32xf32>
    %c0_25 = arith.constant 0 : index
    %c0_26 = arith.constant 0 : index
    %c0_27 = arith.constant 0 : index
    %51 = vector.load %arg8[%c0_25, %c0_26, %c0_27] : memref<1x64x32xf32, #tpu.memory_space<vmem>>, vector<1x64x32xf32>
    %52 = vector.shape_cast %51 : vector<1x64x32xf32> to vector<64x32xf32>
    %53 = vector.shape_cast %50 : vector<64x32xf32> to vector<1x64x32xf32>
    tpu.vector_store %arg8[%c0_25, %c0_26, %c0_27], %53 {strides = array<i32>} : memref<1x64x32xf32, #tpu.memory_space<vmem>>, vector<1x64x32xf32>,
    return
  }
  func.func @transform_0(%arg0: i32, %arg1: i32) -> (i32, i32, i32) {
    %c0_i32 = arith.constant 0 : i32
    %c0_i32_0 = arith.constant 0 : i32
    return %arg0, %arg1, %c0_i32 : i32, i32, i32
  }
  func.func @transform_1(%arg0: i32, %arg1: i32) -> (i32, i32, i32) {
    %c0_i32 = arith.constant 0 : i32
    %c0_i32_0 = arith.constant 0 : i32
    %c0_i32_1 = arith.constant 0 : i32
    return %arg0, %c0_i32, %c0_i32_0 : i32, i32, i32
  }
  func.func @transform_2(%arg0: i32, %arg1: i32) -> (i32, i32) {
    %c0_i32 = arith.constant 0 : i32
    %c0_i32_0 = arith.constant 0 : i32
    %c0_i32_1 = arith.constant 0 : i32
    return %c0_i32, %c0_i32_0 : i32, i32
  }
  func.func @transform_3(%arg0: i32, %arg1: i32) -> (i32, i32, i32) {
    %c0_i32 = arith.constant 0 : i32
    %c0_i32_0 = arith.constant 0 : i32
    %c0_i32_1 = arith.constant 0 : i32
    return %arg0, %c0_i32, %c0_i32_0 : i32, i32, i32
  }
  func.func @transform_4(%arg0: i32, %arg1: i32) -> (i32, i32) {
    %c0_i32 = arith.constant 0 : i32
    %c0_i32_0 = arith.constant 0 : i32
    %c0_i32_1 = arith.constant 0 : i32
    return %c0_i32, %c0_i32_0 : i32, i32
  }
  func.func @transform_5(%arg0: i32, %arg1: i32) -> (i32, i32) {
    %c0_i32 = arith.constant 0 : i32
    %c0_i32_0 = arith.constant 0 : i32
    %c0_i32_1 = arith.constant 0 : i32
    return %c0_i32, %c0_i32_0 : i32, i32
  }
  func.func @transform_6(%arg0: i32, %arg1: i32) -> (i32, i32, i32) {
    %c0_i32 = arith.constant 0 : i32
    %c0_i32_0 = arith.constant 0 : i32
    return %arg0, %arg1, %c0_i32 : i32, i32, i32
  }
}

</mosaic_0001>

<bundles_post_ra>
// kernel: tpu_custom_call.1
= control target key start
LH: loop header
LB: loop body
LE: loop exit
PB: predicated region body
PF: predicated region fallthrough
CT: control target
= control target key end

     0   :  { %s5199_s21 = smov 0   ;;  %s5201_s22 = smov 0   ;;  %s6468_s0 = inlined_call_operand.vmem [shape: f32[2,64,32], index: 0, kind: input, shape index: {}]   ;;  %s6469_s1 = inlined_call_operand.vmem [shape: f32[2,16,80], index: 1, kind: input, shape index: {}]   ;;  %s6470_s2 = inlined_call_operand.vmem [shape: f32[32,16], index: 2, kind: input, shape index: {}]   ;;  %s6471_s3 = inlined_call_operand.vmem [shape: f32[2,80,32], index: 3, kind: input, shape index: {}]   ;;  %s6472_s4 = inlined_call_operand.vmem [shape: f32[80,80], index: 4, kind: input, shape index: {}]   ;;  %s6473_s5 = inlined_call_operand.vmem [shape: f32[3,32], index: 5, kind: input, shape index: {}]   ;;  %s6474_s6 = inlined_call_operand.vmem [shape: f32[2,64,32], index: 6, kind: output, shape index: {}]  }
   0x1   :  { %s5203_s23 = smov 0  }
   0x2 LB: > { %s28_s24 = sadd.s32 1, %s5158_s22  ;;  %p4098_p0 = scmp.ge.s32.totalorder %s5162_s23, 1  ;;  %s5162_s23 = sphi %s5203_s23, %s16_s23   ;;  %s5158_s22 = sphi %s5201_s22, %s6585_s22   ;;  %s5154_s21 = sphi %s5199_s21, %s6584_s21  }
   0x3   : > { %p30_p1 = scmp.ge.s32.totalorder %s28_s24, 2  ;;  %p253_p2 = scmp.lt.s32.totalorder %s5162_s23, 3 }
   0x5   : > { %s6587_s24 = smov (%p30_p1, %s28_s24), 0  ;;  %p254_p3 = pnand %p4098_p0, %p253_p2 }
   0x7   : > { %257 = sbr.rel (%p254_p3) target bundleno = 1409 (0x581), region = 44 }
   0xc   : > { %v343_v0 = vld [vmem:[%s6470_s2 + $0x18] sm:$0xff]  ;;  %v342_v1 = vld [vmem:[%s6470_s2 + $0x10] sm:$0xff]  ;;  %v341_v2 = vld [vmem:[%s6470_s2 + $0x8] sm:$0xff]  ;;  %p302_p4 = scmp.lt.s32.totalorder %s5154_s21, 1  ;;  %vm344_vm0 = vcmask 261120   ;;  %vm1157_vm1 = vcmask 130048  }
   0xd   : > { %v5226_v3 = vand.u32 4294901760, %v343_v0  ;;  %v5228_v4 = vand.u32 4294901760, %v342_v1  ;;  %v5230_v5 = vand.u32 4294901760, %v341_v2  ;;  %v340_v6 = vld [vmem:[%s6470_s2] sm:$0xff]  ;;  %vm1942_vm2 = vcmask 654336  }
   0xe   : > { %v5235_v7 = vand.u32 4294901760, %v340_v6  ;;  %s6589_s21 = smov (!%p302_p4, %s5154_s21), 1 }
   0xf   : > { %4459 = vmatprep.subr.mxu0 %v5226_v3  ;;  %v5241_v8 = vsub.f32 %v343_v0, %v5226_v3  ;;  %v5244_v9 = vsub.f32 %v342_v1, %v5228_v4  ;;  %v5247_v10 = vsub.f32 %v341_v2, %v5230_v5  ;;  %s4108_s9 = sshll.u32 %s6589_s21, 6  ;;  %s4109_s13 = sshll.u32 %s6589_s21, 4 }
  0x10   : > { %4460 = vmatpush3.msra.mxu0 %v5226_v3  ;;  %v5251_v11 = vsub.f32 %v340_v6, %v5235_v7  ;;  %s5269_s12 = scalar_lea.vmem %s6468_s0, %s4108_s9  ;;  %s315_s16 = scalar_lea.vmem %s6469_s1, %s4109_s13 }
  0x11   : > { %v5255_v12 = vand.u32 4294901760, %v5241_v8  ;;  %4461 = vmatprep.subr.mxu0 %v5228_v4  ;;  %v5259_v13 = vand.u32 4294901760, %v5244_v9  ;;  %v5262_v14 = vand.u32 4294901760, %v5247_v10  ;;  %v331_v16 = vld [vmem:[%s5269_s12] sm:$0xff]  ;;  %v332_v17 = vld [vmem:[%s5269_s12 + $0x8] sm:$0xff]  ;;  %v333_v18 = vld [vmem:[%s5269_s12 + $0x10] sm:$0xff]  ;;  %s6419_s30 = scalar_lea.vmem %s6474_s6, %s4108_s9 }
  0x12   : > { %4462 = vmatpush3.msra.mxu0 %v5228_v4  ;;  %v5273_v15 = vand.u32 4294901760, %v5251_v11  ;;  %v346_v22 = vsel %vm344_vm0, %v331_v16, 0  ;;  %v334_v23 = vld [vmem:[%s5269_s12 + $0x18] sm:$0xff]  ;;  %v349_v26 = vsel %vm344_vm0, %v332_v17, 0  ;;  %v352_v27 = vsel %vm344_vm0, %v333_v18, 0  ;;  %v335_v28 = vld [vmem:[%s5269_s12 + $0x20] sm:$0xff] }
  0x13   : > { %v546_v19 = vsub.f32 %v5241_v8, %v5255_v12  ;;  %v553_v20 = vsub.f32 %v5244_v9, %v5259_v13  ;;  %4463 = vmatprep.subr.mxu0 %v5230_v5  ;;  %v560_v21 = vsub.f32 %v5247_v10, %v5262_v14  ;;  %v5290_v25 = vand.u32 4294901760, %v346_v22  ;;  %v336_v29 = vld [vmem:[%s5269_s12 + $0x28] sm:$0xff]  ;;  %v337_v38 = vld [vmem:[%s5269_s12 + $0x30] sm:$0xff]  ;;  %v338_v39 = vld [vmem:[%s5269_s12 + $0x38] sm:$0xff]  ;;  %s5059_s19 = smul.u32 80, %s6589_s21 }
  0x14   : > { %4464 = vmatpush3.msra.mxu0 %v5230_v5  ;;  %v567_v24 = vsub.f32 %v5251_v11, %v5273_v15  ;;  %v5297_v33 = vand.u32 4294901760, %v349_v26  ;;  %v5304_v36 = vand.u32 4294901760, %v352_v27  ;;  %v355_v37 = vsel %vm344_vm0, %v334_v23, 0 }
  0x15   : > { %v547_v30 = vand.u32 4294901760, %v546_v19  ;;  %v554_v31 = vand.u32 4294901760, %v553_v20  ;;  %v561_v32 = vand.u32 4294901760, %v560_v21  ;;  %4465 = vmatprep.subr.mxu0 %v5235_v7  ;;  %v5301_v35 = vsub.f32 %v346_v22, %v5290_v25  ;;  %4487 = vmatprep.mubr.f32.mxu1 %v5290_v25  ;;  %s5992_s26 = scalar_lea.vmem %s6471_s3, %s5059_s19 }
  0x16   : > { %4466 = vmatpush3.msra.mxu0 %v5235_v7  ;;  %v568_v34 = vand.u32 4294901760, %v567_v24  ;;  %v5311_v40 = vsub.f32 %v349_v26, %v5297_v33  ;;  %v5313_v41 = vand.u32 4294901760, %v355_v37  ;;  %v358_v42 = vsel %vm344_vm0, %v335_v28, 0 }
  0x17   : > { %4479 = vmatprep.subr.mxu1 %v547_v30  ;;  %4499 = vmatprep.subr.mxu0 %v5241_v8  ;;  %v361_v43 = vsel %vm344_vm0, %v336_v29, 0  ;;  %v440_v44 = vand.u32 4294901760, %v5301_v35  ;;  %v5319_v45 = vsub.f32 %v352_v27, %v5304_v36  ;;  %v5321_v46 = vand.u32 4294901760, %v358_v42 }
  0x18   : > { %4480 = vmatpush3.msra.mxu1 %v547_v30  ;;  %v5323_v47 = vand.u32 4294901760, %v361_v43  ;;  %v450_v48 = vand.u32 4294901760, %v5311_v40  ;;  %v5327_v49 = vsub.f32 %v355_v37, %v5313_v41  ;;  %v364_v50 = vsel %vm344_vm0, %v337_v38, 0 }
  0x19   : > { %4481 = vmatprep.subr.mxu1 %v554_v31  ;;  %v367_v51 = vsel %vm344_vm0, %v338_v39, 0  ;;  %v441_v52 = vsub.f32 %v5301_v35, %v440_v44  ;;  %v460_v53 = vand.u32 4294901760, %v5319_v45  ;;  %v5336_v54 = vsub.f32 %v358_v42, %v5321_v46 }
  0x1a   : > { %4482 = vmatpush3.msra.mxu1 %v554_v31  ;;  %v5339_v55 = vsub.f32 %v361_v43, %v5323_v47  ;;  %v451_v56 = vsub.f32 %v5311_v40, %v450_v48  ;;  %v470_v57 = vand.u32 4294901760, %v5327_v49  ;;  %v5345_v58 = vand.u32 4294901760, %v364_v50 }
  0x1b   : > { %4483 = vmatprep.subr.mxu1 %v561_v32  ;;  %v5347_v59 = vand.u32 4294901760, %v367_v51  ;;  %v442_v60 = vand.u32 4294901760, %v441_v52  ;;  %v461_v61 = vsub.f32 %v5319_v45, %v460_v53  ;;  %v480_v62 = vand.u32 4294901760, %v5336_v54 }
  0x1c   : > { %4484 = vmatpush3.msra.mxu1 %v561_v32  ;;  %v490_v63 = vand.u32 4294901760, %v5339_v55  ;;  %v452_v0 = vand.u32 4294901760, %v451_v56  ;;  %v471_v1 = vsub.f32 %v5327_v49, %v470_v57  ;;  %v5358_v2 = vsub.f32 %v364_v50, %v5345_v58 }
  0x1d   : > { %4485 = vmatprep.subr.mxu1 %v568_v34  ;;  %v5361_v6 = vsub.f32 %v367_v51, %v5347_v59  ;;  %4467 = vmatprep.mubr.f32.mxu0 %v442_v60  ;;  %v462_v16 = vand.u32 4294901760, %v461_v61  ;;  %v481_v17 = vsub.f32 %v5336_v54, %v480_v62 }
  0x1e   : > { %4486 = vmatpush3.msra.mxu1 %v568_v34  ;;  %4468 = vmatmul.mubr.f32.vlgmr.msra.gmra.mxu0 %v452_v0  ;;  %v472_v18 = vand.u32 4294901760, %v471_v1  ;;  %v491_v19 = vsub.f32 %v5339_v55, %v490_v63  ;;  %v500_v20 = vand.u32 4294901760, %v5358_v2 }
  0x1f   : > { %4488 = vmatmul.mubr.f32.vlgmr.msra.gmra.mxu1 %v5297_v33  ;;  %v510_v21 = vand.u32 4294901760, %v5361_v6  ;;  %4500 = vmatpush3.msra.mxu0 %v5241_v8  ;;  %v482_v22 = vand.u32 4294901760, %v481_v17 }
  0x20   : > { %4519 = vmatprep.subr.mxu1 %v5226_v3  ;;  %4470 = vmatprep.mubr.f32.mxu0 %v462_v16  ;;  %v501_v23 = vsub.f32 %v5358_v2, %v500_v20  ;;  %v492_v24 = vand.u32 4294901760, %v491_v19 }
  0x21   : > { %4520 = vmatpush3.msra.mxu1 %v5226_v3  ;;  %4490 = vmatprep.mubr.f32.mxu1 %v5304_v36  ;;  %v511_v26 = vsub.f32 %v5361_v6, %v510_v21 }
  0x22   : > { %4501 = vmatprep.subr.mxu0 %v5244_v9  ;;  %4471 = vmatmul.mubr.f32.gmra.mxu0 %v472_v18  ;;  %v502_v8 = vand.u32 4294901760, %v501_v23 }
  0x23   : > { %4491 = vmatmul.mubr.f32.gmra.mxu1 %v5313_v41  ;;  %4502 = vmatpush3.msra.mxu0 %v5244_v9  ;;  %v512_v27 = vand.u32 4294901760, %v511_v26 }
  0x24   : > { %4521 = vmatprep.subr.mxu1 %v5228_v4  ;;  %4473 = vmatprep.mubr.f32.mxu0 %v482_v22 }
  0x25   : > { %4522 = vmatpush3.msra.mxu1 %v5228_v4  ;;  %4493 = vmatprep.mubr.f32.mxu1 %v5321_v46 }
  0x26   : > { %4503 = vmatprep.subr.mxu0 %v5247_v10  ;;  %4474 = vmatmul.mubr.f32.gmra.mxu0 %v492_v24 }
  0x27   : > { %4494 = vmatmul.mubr.f32.gmra.mxu1 %v5323_v47  ;;  %4504 = vmatpush3.msra.mxu0 %v5247_v10 }
  0x28   : > { %4523 = vmatprep.subr.mxu1 %v5230_v5  ;;  %4476 = vmatprep.mubr.f32.mxu0 %v502_v8 }
  0x29   : > { %4524 = vmatpush3.msra.mxu1 %v5230_v5  ;;  %4496 = vmatprep.mubr.f32.mxu1 %v5345_v58 }
  0x2a   : > { %4505 = vmatprep.subr.mxu0 %v5251_v11  ;;  %4477 = vmatmul.mubr.f32.gmra.mxu0 %v512_v27 }
  0x2b   : > { %4497 = vmatmul.mubr.f32.gmra.mxu1 %v5347_v59  ;;  %4506 = vmatpush3.msra.mxu0 %v5251_v11 }
  0x2c   : > { %4525 = vmatprep.subr.mxu1 %v5235_v7  ;;  %4507 = vmatprep.mubr.f32.mxu0 %v5301_v35 }
  0x2d   : > { %4526 = vmatpush3.msra.mxu1 %v5235_v7  ;;  %4527 = vmatprep.mubr.f32.mxu1 %v440_v44 }
  0x2e   : > { %4539 = vmatprep.subr.mxu0 %v5255_v12  ;;  %4508 = vmatmul.mubr.f32.vlgmr.msra.gmra.mxu0 %v5311_v40 }
  0x2f   : > { %4528 = vmatmul.mubr.f32.vlgmr.msra.gmra.mxu1 %v450_v48  ;;  %4540 = vmatpush3.msra.mxu0 %v5255_v12 }
  0x30   : > { %4559 = vmatprep.subr.mxu1 %v5226_v3  ;;  %4510 = vmatprep.mubr.f32.mxu0 %v5319_v45 }
  0x31   : > { %4560 = vmatpush3.msra.mxu1 %v5226_v3  ;;  %4530 = vmatprep.mubr.f32.mxu1 %v460_v53  ;;  %v1156_v3 = vld [vmem:[%s315_s16 + $0x8] sm:$0xff] }
  0x32   : > { %4541 = vmatprep.subr.mxu0 %v5259_v13  ;;  %4511 = vmatmul.mubr.f32.gmra.mxu0 %v5327_v49 }
  0x33   : > { %4531 = vmatmul.mubr.f32.gmra.mxu1 %v470_v57  ;;  %4542 = vmatpush3.msra.mxu0 %v5259_v13 }
  0x34   : > { %4561 = vmatprep.subr.mxu1 %v5228_v4  ;;  %4513 = vmatprep.mubr.f32.mxu0 %v5336_v54 }
  0x35   : > { %4562 = vmatpush3.msra.mxu1 %v5228_v4  ;;  %4533 = vmatprep.mubr.f32.mxu1 %v480_v62  ;;  %v5451_v4 = vand.u32 4294901760, %v1156_v3 }
  0x36   : > { %4543 = vmatprep.subr.mxu0 %v5262_v14  ;;  %4514 = vmatmul.mubr.f32.gmra.mxu0 %v5339_v55 }
  0x37   : > { %4534 = vmatmul.mubr.f32.gmra.mxu1 %v490_v63  ;;  %4544 = vmatpush3.msra.mxu0 %v5262_v14 }
  0x38   : > { %4563 = vmatprep.subr.mxu1 %v5230_v5  ;;  %4516 = vmatprep.mubr.f32.mxu0 %v5358_v2 }
  0x39   : > { %4564 = vmatpush3.msra.mxu1 %v5230_v5  ;;  %4536 = vmatprep.mubr.f32.mxu1 %v500_v20  ;;  %v1155_v5 = vld [vmem:[%s315_s16] sm:$0xff] }
  0x3a   : > { %4545 = vmatprep.subr.mxu0 %v5273_v15  ;;  %4517 = vmatmul.mubr.f32.gmra.mxu0 %v5361_v6  ;;  %v5457_v9 = vand.u32 4294901760, %v1155_v5 }
  0x3b   : > { %4537 = vmatmul.mubr.f32.gmra.mxu1 %v510_v21  ;;  %4546 = vmatpush3.msra.mxu0 %v5273_v15 }
  0x3c   : > { %4565 = vmatprep.subr.mxu1 %v5235_v7  ;;  %4547 = vmatprep.mubr.f32.mxu0 %v5290_v25  ;;  %v5464_v11 = vsub.f32 %v1155_v5, %v5457_v9 }
  0x3d   : > { %4566 = vmatpush3.msra.mxu1 %v5235_v7  ;;  %4567 = vmatprep.mubr.f32.mxu1 %v5290_v25  ;;  %v5455_v7 = vsub.f32 %v1156_v3, %v5451_v4 }
  0x3e   : > { %4548 = vmatmul.mubr.f32.vlgmr.msra.gmra.mxu0 %v5297_v33  ;;  %4579 = vmatprep.subr.mxu0 %v5451_v4  ;;  %v5471_v13 = vand.u32 4294901760, %v5464_v11 }
  0x3f   : > { %4568 = vmatmul.mubr.f32.vlgmr.msra.gmra.mxu1 %v5297_v33  ;;  %4550 = vmatprep.mubr.f32.mxu0 %v5304_v36  ;;  %v5461_v10 = vand.u32 4294901760, %v5455_v7 }
  0x40   : > { %4570 = vmatprep.mubr.f32.mxu1 %v5304_v36  ;;  %4580 = vmatpush3.msra.mxu0 %v5451_v4  ;;  %v1368_v15 = vsub.f32 %v5464_v11, %v5471_v13 }
  0x41   : > { %4581 = vmatprep.subr.mxu0 %v5457_v9  ;;  %v1361_v12 = vsub.f32 %v5455_v7, %v5461_v10 }
  0x42   : > { %4551 = vmatmul.mubr.f32.gmra.mxu0 %v5313_v41  ;;  %v1369_v25 = vand.u32 4294901760, %v1368_v15 }
  0x43   : > { %4571 = vmatmul.mubr.f32.gmra.mxu1 %v5313_v41  ;;  %4553 = vmatprep.mubr.f32.mxu0 %v5321_v46  ;;  %v1362_v14 = vand.u32 4294901760, %v1361_v12 }
  0x44   : > { %4573 = vmatprep.mubr.f32.mxu1 %v5321_v46  ;;  %4582 = vmatpush3.msra.mxu0 %v5457_v9 }
  0x45   : > { %4611 = vmatprep.subr.mxu0 %v5455_v7  ;;  %4595 = vmatprep.subr.mxu1 %v1362_v14 }
  0x46   : > { %4554 = vmatmul.mubr.f32.gmra.mxu0 %v5323_v47  ;;  %4596 = vmatpush3.msra.mxu1 %v1362_v14 }
  0x47   : > { %4574 = vmatmul.mubr.f32.gmra.mxu1 %v5323_v47  ;;  %4556 = vmatprep.mubr.f32.mxu0 %v5345_v58 }
  0x48   : > { %4576 = vmatprep.mubr.f32.mxu1 %v5345_v58  ;;  %4597 = vmatprep.subr.mxu1 %v1369_v25 }
  0x49   : > { %4598 = vmatpush3.msra.mxu1 %v1369_v25 }
  0x4a   : > { %4557 = vmatmul.mubr.f32.gmra.mxu0 %v5347_v59  ;;  %4627 = vmatprep.subr.mxu1 %v5451_v4 }
  0x4b   : > { %4577 = vmatmul.mubr.f32.gmra.mxu1 %v5347_v59 }
  0xde   : > { %v4469_v28 = vpop.f32.mrf.mxu0 }
  0xdf   : > { %v4489_v29 = vpop.f32.mrf.mxu1 }
  0xe0   : > { %v444_v30 = vpop.f32.mrf.mxu0  ;;  %v612_v54 = vadd.f32 %v4489_v29, %v4469_v28 }
  0xe1   : > { %v605_v31 = vpop.f32.mrf.mxu1 }
  0xe2   : > { %v4472_v32 = vpop.f32.mrf.mxu0  ;;  %v606_v57 = vadd.f32 %v605_v31, %v444_v30 }
  0xe3   : > { %v4492_v33 = vpop.f32.mrf.mxu1 }
  0xe4   : > { %v464_v34 = vpop.f32.mrf.mxu0  ;;  %v624_v61 = vadd.f32 %v4492_v33, %v4472_v32 }
  0xe5   : > { %v617_v35 = vpop.f32.mrf.mxu1 }
  0xe6   : > { %v4475_v36 = vpop.f32.mrf.mxu0  ;;  %v618_v63 = vadd.f32 %v617_v35, %v464_v34 }
  0xe7   : > { %v4495_v37 = vpop.f32.mrf.mxu1 }
  0xe8   : > { %v484_v38 = vpop.f32.mrf.mxu0  ;;  %v636_v16 = vadd.f32 %v4495_v37, %v4475_v36 }
  0xe9   : > { %v629_v39 = vpop.f32.mrf.mxu1 }
  0xea   : > { %v4478_v40 = vpop.f32.mrf.mxu0  ;;  %v630_v26 = vadd.f32 %v629_v39, %v484_v38 }
  0xeb   : > { %v4498_v41 = vpop.f32.mrf.mxu1 }
  0xec   : > { %v504_v42 = vpop.f32.mrf.mxu0  ;;  %v648_v5 = vadd.f32 %v4498_v41, %v4478_v40 }
  0xed   : > { %v641_v43 = vpop.f32.mrf.mxu1 }
  0xee   : > { %v4509_v44 = vpop.f32.mrf.mxu0  ;;  %v642_v31 = vadd.f32 %v641_v43, %v504_v42 }
  0xef   : > { %v4529_v45 = vpop.f32.mrf.mxu1  ;;  %v735_v58 = vadd.f32 %v4509_v44, %v612_v54 }
  0xf0   : > { %v727_v46 = vpop.f32.mrf.mxu0 }
  0xf1   : > { %v853_v47 = vpop.f32.mrf.mxu1  ;;  %v728_v62 = vadd.f32 %v727_v46, %v606_v57  ;;  %v862_v2 = vadd.f32 %v4529_v45, %v735_v58 }
  0xf2   : > { %v4512_v48 = vpop.f32.mrf.mxu0 }
  0xf3   : > { %v4532_v49 = vpop.f32.mrf.mxu1  ;;  %v749_v6 = vadd.f32 %v4512_v48, %v624_v61  ;;  %v854_v20 = vadd.f32 %v853_v47, %v728_v62 }
  0xf4   : > { %v741_v50 = vpop.f32.mrf.mxu0 }
  0xf5   : > { %v869_v51 = vpop.f32.mrf.mxu1  ;;  %v742_v17 = vadd.f32 %v741_v50, %v618_v63  ;;  %v878_v8 = vadd.f32 %v4532_v49, %v749_v6 }
  0xf6   : > { %v4515_v52 = vpop.f32.mrf.mxu0 }
  0xf7   : > { %v4535_v53 = vpop.f32.mrf.mxu1  ;;  %v763_v22 = vadd.f32 %v4515_v52, %v636_v16  ;;  %v870_v12 = vadd.f32 %v869_v51, %v742_v17 }
  0xf8   : > { %v755_v55 = vpop.f32.mrf.mxu0 }
  0xf9   : > { %v885_v56 = vpop.f32.mrf.mxu1  ;;  %v756_v25 = vadd.f32 %v755_v55, %v630_v26  ;;  %v894_v32 = vadd.f32 %v4535_v53, %v763_v22 }
  0xfa   : > { %v4518_v59 = vpop.f32.mrf.mxu0 }
  0xfb   : > { %v4538_v60 = vpop.f32.mrf.mxu1  ;;  %v777_v36 = vadd.f32 %v4518_v59, %v648_v5  ;;  %v886_v47 = vadd.f32 %v885_v56, %v756_v25 }
  0xfc   : > { %v769_v0 = vpop.f32.mrf.mxu0 }
  0xfd   : > { %v901_v1 = vpop.f32.mrf.mxu1  ;;  %v770_v40 = vadd.f32 %v769_v0, %v642_v31  ;;  %v910_v54 = vadd.f32 %v4538_v60, %v777_v36 }
  0xfe   : > { %v4549_v18 = vpop.f32.mrf.mxu0 }
  0xff   : > { %v4569_v19 = vpop.f32.mrf.mxu1  ;;  %v999_v21 = vadd.f32 %v4549_v18, %v862_v2  ;;  %v902_v58 = vadd.f32 %v901_v1, %v770_v40 }
 0x100   : > { %v992_v23 = vpop.f32.mrf.mxu0 }
 0x101   : > { %v1109_v24 = vpop.f32.mrf.mxu1  ;;  %v1116_v27 = vadd.f32 %v4569_v19, %v999_v21  ;;  %v993_v3 = vadd.f32 %v992_v23, %v854_v20 }
 0x102   : > { %v4552_v14 = vpop.f32.mrf.mxu0 }
 0x103   : > { %v4572_v15 = vpop.f32.mrf.mxu1  ;;  %v1162_v28 = vsel %vm1157_vm1, %v1116_v27, 0  ;;  %v1110_v29 = vadd.f32 %v1109_v24, %v993_v3  ;;  %v1011_v30 = vadd.f32 %v4552_v14, %v878_v8 }
 0x104   : > { %v5478_v33 = vand.u32 4294901760, %v1162_v28  ;;  %v1004_v34 = vpop.f32.mrf.mxu0 }
 0x105   : > { %v1121_v35 = vpop.f32.mrf.mxu1  ;;  %v1159_v37 = vsel %vm1157_vm1, %v1110_v29, 0  ;;  %v1128_v38 = vadd.f32 %v4572_v15, %v1011_v30  ;;  %v1005_v39 = vadd.f32 %v1004_v34, %v870_v12 }
 0x106   : > { %v5482_v41 = vsub.f32 %v1162_v28, %v5478_v33  ;;  %v5484_v44 = vand.u32 4294901760, %v1159_v37  ;;  %v4555_v45 = vpop.f32.mrf.mxu0 }
 0x107   : > { %v4575_v46 = vpop.f32.mrf.mxu1  ;;  %v1168_v42 = vsel %vm1157_vm1, %v1128_v38, 0  ;;  %v1122_v43 = vadd.f32 %v1121_v35, %v1005_v39  ;;  %v1023_v48 = vadd.f32 %v4555_v45, %v894_v32 }
 0x108   : > { %v1261_v49 = vand.u32 4294901760, %v5482_v41  ;;  %v5489_v50 = vsub.f32 %v1159_v37, %v5484_v44  ;;  %v5491_v51 = vand.u32 4294901760, %v1168_v42  ;;  %v1016_v52 = vpop.f32.mrf.mxu0  ;;  %4599 = vmatprep.mubr.f32.mxu1 %v5484_v44 }
 0x109   : > { %v1133_v53 = vpop.f32.mrf.mxu1  ;;  %v1165_v55 = vsel %vm1157_vm1, %v1122_v43, 0  ;;  %v1140_v57 = vadd.f32 %v4575_v46, %v1023_v48  ;;  %v1017_v56 = vadd.f32 %v1016_v52, %v886_v47  ;;  %4600 = vmatmul.mubr.f32.vlgmr.msra.gmra.mxu1 %v5478_v33 }
 0x10a   : > { %v5497_v59 = vsub.f32 %v1168_v42, %v5491_v51  ;;  %v5499_v61 = vand.u32 4294901760, %v1165_v55  ;;  %v4558_v62 = vpop.f32.mrf.mxu0  ;;  %v1251_v0 = vand.u32 4294901760, %v5489_v50  ;;  %4628 = vmatpush3.msra.mxu1 %v5451_v4  ;;  %v1262_v60 = vsub.f32 %v5482_v41, %v1261_v49 }
 0x10b   : > { %v4578_v63 = vpop.f32.mrf.mxu1  ;;  %v1174_v2 = vsel %vm1157_vm1, %v1140_v57, 0  ;;  %v1134_v6 = vadd.f32 %v1133_v53, %v1017_v56  ;;  %v1035_v16 = vadd.f32 %v4558_v62, %v910_v54  ;;  %4629 = vmatprep.subr.mxu1 %v5457_v9 }
 0x10c   : > { %v5509_v1 = vsub.f32 %v1165_v55, %v5499_v61  ;;  %v5511_v17 = vand.u32 4294901760, %v1174_v2  ;;  %v1028_v18 = vpop.f32.mrf.mxu0  ;;  %4602 = vmatprep.mubr.f32.mxu1 %v5499_v61  ;;  %v1252_v19 = vsub.f32 %v5489_v50, %v1251_v0  ;;  %4630 = vmatpush3.msra.mxu1 %v5457_v9  ;;  %v1281_v23 = vand.u32 4294901760, %v5497_v59 }
 0x10d   : > { %v1171_v20 = vsel %vm1157_vm1, %v1134_v6, 0  ;;  %v1152_v21 = vadd.f32 %v4578_v63, %v1035_v16  ;;  %v1029_v22 = vadd.f32 %v1028_v18, %v902_v58  ;;  %4603 = vmatmul.mubr.f32.gmra.mxu1 %v5491_v51  ;;  %4659 = vmatprep.subr.mxu1 %v5451_v4  ;;  %v1145_v8 = vpop.f32.mrf.mxu1  ;;  %v1263_v5 = vand.u32 4294901760, %v1262_v60 }
 0x10e   : > { %v5521_v24 = vsub.f32 %v1174_v2, %v5511_v17  ;;  %v5523_v26 = vand.u32 4294901760, %v1171_v20  ;;  %v1253_v27 = vand.u32 4294901760, %v1252_v19  ;;  %v1271_v3 = vand.u32 4294901760, %v5509_v1 }
 0x10f   : > { %v1180_v12 = vsel %vm1157_vm1, %v1152_v21, 0  ;;  %v1146_v14 = vadd.f32 %v1145_v8, %v1029_v22  ;;  %v1282_v15 = vsub.f32 %v5497_v59, %v1281_v23 }
 0x110   : > { %v1290_v25 = vsub.f32 %v1171_v20, %v5523_v26  ;;  %v5529_v28 = vand.u32 4294901760, %v1180_v12  ;;  %4583 = vmatprep.mubr.f32.mxu0 %v1253_v27  ;;  %4605 = vmatprep.mubr.f32.mxu1 %v5523_v26  ;;  %v1272_v29 = vsub.f32 %v5509_v1, %v1271_v3  ;;  %v1301_v30 = vand.u32 4294901760, %v5521_v24 }
 0x111   : > { %v1177_v31 = vsel %vm1157_vm1, %v1146_v14, 0  ;;  %4584 = vmatmul.mubr.f32.vlgmr.msra.gmra.mxu0 %v1263_v5  ;;  %4606 = vmatmul.mubr.f32.gmra.mxu1 %v5511_v17  ;;  %v1283_v37 = vand.u32 4294901760, %v1282_v15 }
 0x112   : > { %v1320_v32 = vsub.f32 %v1180_v12, %v5529_v28  ;;  %v1309_v34 = vand.u32 4294901760, %v1177_v31  ;;  %4612 = vmatpush3.msra.mxu0 %v5455_v7  ;;  %v1273_v35 = vand.u32 4294901760, %v1272_v29  ;;  %v1291_v36 = vand.u32 4294901760, %v1290_v25 }
 0x113   : > { %4613 = vmatprep.subr.mxu0 %v5464_v11  ;;  %v1302_v38 = vsub.f32 %v5521_v24, %v1301_v30 }
 0x114   : > { %v1310_v39 = vsub.f32 %v1177_v31, %v1309_v34  ;;  %4586 = vmatprep.mubr.f32.mxu0 %v1273_v35  ;;  %4608 = vmatprep.mubr.f32.mxu1 %v1309_v34  ;;  %v1292_v40 = vsub.f32 %v1290_v25, %v1291_v36  ;;  %v1321_v45 = vand.u32 4294901760, %v1320_v32 }
 0x115   : > { %4587 = vmatmul.mubr.f32.gmra.mxu0 %v1283_v37  ;;  %4609 = vmatmul.mubr.f32.gmra.mxu1 %v5529_v28  ;;  %v1303_v47 = vand.u32 4294901760, %v1302_v38 }
 0x116   : > { %4631 = vmatprep.mubr.f32.mxu1 %v1251_v0  ;;  %v1293_v46 = vand.u32 4294901760, %v1292_v40  ;;  %4614 = vmatpush3.msra.mxu0 %v5464_v11  ;;  %v1311_v7 = vand.u32 4294901760, %v1310_v39  ;;  %v1322_v42 = vsub.f32 %v1320_v32, %v1321_v45 }
 0x117   : > { %4643 = vmatprep.subr.mxu0 %v5461_v10 }
 0x118   : > { %4589 = vmatprep.mubr.f32.mxu0 %v1293_v46  ;;  %v1312_v43 = vsub.f32 %v1310_v39, %v1311_v7  ;;  %v1323_v52 = vand.u32 4294901760, %v1322_v42 }
 0x119   : > { %4590 = vmatmul.mubr.f32.gmra.mxu0 %v1303_v47  ;;  %4632 = vmatmul.mubr.f32.vlgmr.msra.gmra.mxu1 %v1261_v49 }
 0x11a   : > { %4634 = vmatprep.mubr.f32.mxu1 %v1271_v3  ;;  %v1313_v48 = vand.u32 4294901760, %v1312_v43  ;;  %4660 = vmatpush3.msra.mxu1 %v5451_v4 }
 0x11b   : > { %4661 = vmatprep.subr.mxu1 %v5457_v9 }
 0x11c   : > { %4592 = vmatprep.mubr.f32.mxu0 %v1313_v48  ;;  %4662 = vmatpush3.msra.mxu1 %v5457_v9 }
 0x11d   : > { %4593 = vmatmul.mubr.f32.gmra.mxu0 %v1323_v52  ;;  %4635 = vmatmul.mubr.f32.gmra.mxu1 %v1281_v23 }
 0x11e   : > { %4615 = vmatprep.mubr.f32.mxu0 %v5489_v50  ;;  %4637 = vmatprep.mubr.f32.mxu1 %v1291_v36 }
 0x121   : > { %4616 = vmatmul.mubr.f32.vlgmr.msra.gmra.mxu0 %v5482_v41  ;;  %4638 = vmatmul.mubr.f32.gmra.mxu1 %v1301_v30 }
 0x122   : > { %4644 = vmatpush3.msra.mxu0 %v5461_v10  ;;  %4618 = vmatprep.mubr.f32.mxu0 %v5509_v1 }
 0x123   : > { %4640 = vmatprep.mubr.f32.mxu1 %v1311_v7  ;;  %4645 = vmatprep.subr.mxu0 %v5471_v13 }
 0x124   : > { %4646 = vmatpush3.msra.mxu0 %v5471_v13 }
 0x125   : > { %4619 = vmatmul.mubr.f32.gmra.mxu0 %v5497_v59  ;;  %4641 = vmatmul.mubr.f32.gmra.mxu1 %v1321_v45 }
 0x126   : > { %4621 = vmatprep.mubr.f32.mxu0 %v1290_v25  ;;  %4663 = vmatprep.mubr.f32.mxu1 %v5484_v44 }
 0x129   : > { %4622 = vmatmul.mubr.f32.gmra.mxu0 %v5521_v24  ;;  %4664 = vmatmul.mubr.f32.vlgmr.msra.gmra.mxu1 %v5478_v33 }
 0x12a   : > { %4624 = vmatprep.mubr.f32.mxu0 %v1310_v39  ;;  %4666 = vmatprep.mubr.f32.mxu1 %v5499_v61 }
 0x12d   : > { %4625 = vmatmul.mubr.f32.gmra.mxu0 %v1320_v32  ;;  %4667 = vmatmul.mubr.f32.gmra.mxu1 %v5491_v51 }
 0x12e   : > { %4647 = vmatprep.mubr.f32.mxu0 %v5484_v44  ;;  %4669 = vmatprep.mubr.f32.mxu1 %v5523_v26 }
 0x131   : > { %4648 = vmatmul.mubr.f32.vlgmr.msra.gmra.mxu0 %v5478_v33  ;;  %4670 = vmatmul.mubr.f32.gmra.mxu1 %v5511_v17 }
 0x132   : > { %4650 = vmatprep.mubr.f32.mxu0 %v5499_v61  ;;  %4672 = vmatprep.mubr.f32.mxu1 %v1309_v34 }
 0x135   : > { %4651 = vmatmul.mubr.f32.gmra.mxu0 %v5491_v51  ;;  %4673 = vmatmul.mubr.f32.gmra.mxu1 %v5529_v28 }
 0x136   : > { %4653 = vmatprep.mubr.f32.mxu0 %v5523_v26 }
 0x139   : > { %4654 = vmatmul.mubr.f32.gmra.mxu0 %v5511_v17 }
 0x13a   : > { %4656 = vmatprep.mubr.f32.mxu0 %v1309_v34 }
 0x13d   : > { %4657 = vmatmul.mubr.f32.gmra.mxu0 %v5529_v28 }
 0x1c9   : > { %v4601_v4 = vpop.f32.mrf.mxu1 }
 0x1cb   : > { %v1406_v9 = vpop.f32.mrf.mxu1 }
 0x1cd   : > { %v4604_v10 = vpop.f32.mrf.mxu1 }
 0x1cf   : > { %v1418_v11 = vpop.f32.mrf.mxu1 }
 0x1d1   : > { %v4585_v13 = vpop.f32.mrf.mxu0  ;;  %v4607_v33 = vpop.f32.mrf.mxu1 }
 0x1d2   : > { %v1413_v22 = vadd.f32 %v4601_v4, %v4585_v13 }
 0x1d3   : > { %v1255_v41 = vpop.f32.mrf.mxu0  ;;  %v1430_v44 = vpop.f32.mrf.mxu1 }
 0x1d4   : > { %v1407_v23 = vadd.f32 %v1406_v9, %v1255_v41 }
 0x1d5   : > { %v4588_v49 = vpop.f32.mrf.mxu0  ;;  %v4610_v50 = vpop.f32.mrf.mxu1 }
 0x1d6   : > { %v1425_v5 = vadd.f32 %v4604_v10, %v4588_v49 }
 0x1d7   : > { %v1275_v51 = vpop.f32.mrf.mxu0  ;;  %v1442_v53 = vpop.f32.mrf.mxu1 }
 0x1d8   : > { %v1419_v12 = vadd.f32 %v1418_v11, %v1275_v51 }
 0x1d9   : > { %v4591_v54 = vpop.f32.mrf.mxu0  ;;  %v4633_v55 = vpop.f32.mrf.mxu1 }
 0x1da   : > { %v1437_v31 = vadd.f32 %v4607_v33, %v4591_v54 }
 0x1db   : > { %v1295_v57 = vpop.f32.mrf.mxu0  ;;  %v1648_v56 = vpop.f32.mrf.mxu1 }
 0x1dc   : > { %v1431_v34 = vadd.f32 %v1430_v44, %v1295_v57 }
 0x1dd   : > { %v4594_v58 = vpop.f32.mrf.mxu0  ;;  %v4636_v59 = vpop.f32.mrf.mxu1 }
 0x1de   : > { %v1449_v47 = vadd.f32 %v4610_v50, %v4594_v58 }
 0x1df   : > { %v1315_v61 = vpop.f32.mrf.mxu0  ;;  %v1664_v62 = vpop.f32.mrf.mxu1 }
 0x1e0   : > { %v1443_v42 = vadd.f32 %v1442_v53, %v1315_v61  ;;  %v2000_v61 = vld [vmem:[%s6472_s4 + $0x48] sm:$0xff] }
 0x1e1   : > { %v4617_v63 = vpop.f32.mrf.mxu0  ;;  %v4639_v0 = vpop.f32.mrf.mxu1 }
 0x1e2   : > { %v1532_v8 = vadd.f32 %v4617_v63, %v1413_v22  ;;  %v1998_v22 = vld [vmem:[%s6472_s4 + $0x38] sm:$0xff] }
 0x1e3   : > { %v1524_v60 = vpop.f32.mrf.mxu0  ;;  %v1680_v2 = vpop.f32.mrf.mxu1 }
 0x1e4   : > { %v1525_v27 = vadd.f32 %v1524_v60, %v1407_v23  ;;  %v1657_v29 = vadd.f32 %v4633_v55, %v1532_v8 }
 0x1e5   : > { %v4620_v6 = vpop.f32.mrf.mxu0  ;;  %v4642_v16 = vpop.f32.mrf.mxu1 }
 0x1e6   : > { %v1546_v25 = vadd.f32 %v4620_v6, %v1425_v5  ;;  %v1649_v30 = vadd.f32 %v1648_v56, %v1525_v27  ;;  %v1997_v5 = vld [vmem:[%s6472_s4 + $0x30] sm:$0xff] }
 0x1e7   : > { %v1538_v1 = vpop.f32.mrf.mxu0  ;;  %v1696_v17 = vpop.f32.mrf.mxu1 }
 0x1e8   : > { %v1539_v28 = vadd.f32 %v1538_v1, %v1419_v12  ;;  %v1673_v45 = vadd.f32 %v4636_v59, %v1546_v25  ;;  %v5635_v25 = vand.u32 4294901760, %v1997_v5 }
 0x1e9   : > { %v4623_v18 = vpop.f32.mrf.mxu0  ;;  %v4665_v19 = vpop.f32.mrf.mxu1 }
 0x1ea   : > { %v1560_v37 = vadd.f32 %v4623_v18, %v1437_v31  ;;  %v1665_v46 = vadd.f32 %v1664_v62, %v1539_v28 }
 0x1eb   : > { %v1552_v20 = vpop.f32.mrf.mxu0  ;;  %v1896_v21 = vpop.f32.mrf.mxu1 }
 0x1ec   : > { %v1553_v40 = vadd.f32 %v1552_v20, %v1431_v34  ;;  %v1689_v13 = vadd.f32 %v4639_v0, %v1560_v37  ;;  %v5589_v0 = vand.u32 4294901760, %v2000_v61  ;;  %v1995_v37 = vld [vmem:[%s6472_s4 + $0x20] sm:$0xff] }
 0x1ed   : > { %v4626_v24 = vpop.f32.mrf.mxu0  ;;  %v4668_v26 = vpop.f32.mrf.mxu1 }
 0x1ee   : > { %v1574_v10 = vadd.f32 %v4626_v24, %v1449_v47  ;;  %v1681_v44 = vadd.f32 %v1680_v2, %v1553_v40  ;;  %4675 = vmatprep.subr.mxu0 %v5589_v0  ;;  %v1994_v47 = vld [vmem:[%s6472_s4 + $0x18] sm:$0xff] }
 0x1ef   : > { %v1566_v3 = vpop.f32.mrf.mxu0  ;;  %v1908_v14 = vpop.f32.mrf.mxu1  ;;  %4676 = vmatpush3.msra.mxu0 %v5589_v0 }
 0x1f0   : > { %v1567_v41 = vadd.f32 %v1566_v3, %v1443_v42  ;;  %v1705_v58 = vadd.f32 %v4642_v16, %v1574_v10  ;;  %v1999_v16 = vld [vmem:[%s6472_s4 + $0x40] sm:$0xff]  ;;  %v1993_v10 = vld [vmem:[%s6472_s4 + $0x10] sm:$0xff] }
 0x1f1   : > { %v4649_v15 = vpop.f32.mrf.mxu0  ;;  %v4671_v38 = vpop.f32.mrf.mxu1 }
 0x1f2   : > { %v1788_v35 = vadd.f32 %v4649_v15, %v1657_v29  ;;  %v1697_v62 = vadd.f32 %v1696_v17, %v1567_v41  ;;  %v5601_v17 = vsub.f32 %v2000_v61, %v5589_v0  ;;  %v1996_v29 = vld [vmem:[%s6472_s4 + $0x28] sm:$0xff]  ;;  %v5695_v41 = vand.u32 4294901760, %v1993_v10 }
 0x1f3   : > { %v1781_v32 = vpop.f32.mrf.mxu0  ;;  %v1920_v11 = vpop.f32.mrf.mxu1  ;;  %v5650_v34 = vand.u32 4294901760, %v1996_v29 }
 0x1f4   : > { %v1782_v36 = vadd.f32 %v1781_v32, %v1649_v30  ;;  %v5574_v9 = vadd.f32 %v4665_v19, %v1788_v35  ;;  %v5612_v24 = vand.u32 4294901760, %v5601_v17  ;;  %v5648_v32 = vsub.f32 %v1997_v5, %v5635_v25 }
 0x1f5   : > { %v4652_v39 = vpop.f32.mrf.mxu0  ;;  %v4674_v56 = vpop.f32.mrf.mxu1  ;;  %v5667_v40 = vsub.f32 %v1996_v29, %v5650_v34 }
 0x1f6   : > { %v5570_v7 = vadd.f32 %v1896_v21, %v1782_v36  ;;  %v1800_v48 = vadd.f32 %v4652_v39, %v1673_v45  ;;  %v1946_v55 = vsel %vm1942_vm2, %v5574_v9, -inf  ;;  %v5604_v21 = vand.u32 4294901760, %v1999_v16 }
 0x1f7   : > { %v1793_v43 = vpop.f32.mrf.mxu0  ;;  %v1932_v20 = vpop.f32.mrf.mxu1  ;;  %v5664_v39 = vand.u32 4294901760, %v5648_v32  ;;  %v5669_v45 = vand.u32 4294901760, %v1995_v37 }
 0x1f8   : > { %v1794_v52 = vadd.f32 %v1793_v43, %v1665_v46  ;;  %v1943_v4 = vsel %vm1942_vm2, %v5570_v7, -inf  ;;  %v5582_v57 = vadd.f32 %v4668_v26, %v1800_v48  ;;  %v5614_v26 = vand.u32 4294901760, %v1998_v22  ;;  %4677 = vmatprep.subr.mxu0 %v5604_v21 }
 0x1f9   : > { %v4655_v33 = vpop.f32.mrf.mxu0  ;;  %1944 = vmax.xlane.f32.xlu0 %v1943_v4  ;;  %v5622_v3 = vsub.f32 %v1999_v16, %v5604_v21  ;;  %4678 = vmatpush3.msra.mxu0 %v5604_v21  ;;  %v2217_v43 = vsub.f32 %v5648_v32, %v5664_v39  ;;  %v5678_v48 = vand.u32 4294901760, %v5667_v40  ;;  %v5684_v4 = vand.u32 4294901760, %v1994_v47 }
 0x1fa   : > { %v5576_v49 = vadd.f32 %v1908_v14, %v1794_v52  ;;  %v1812_v50 = vadd.f32 %v4655_v33, %v1689_v13  ;;  %v1952_v18 = vsel %vm1942_vm2, %v5582_v57, -inf  ;;  %v2196_v14 = vsub.f32 %v5601_v17, %v5612_v24  ;;  %4679 = vmatprep.subr.mxu0 %v5614_v26 }
 0x1fb   : > { %v1805_v51 = vpop.f32.mrf.mxu0  ;;  %v5633_v15 = vsub.f32 %v1998_v22, %v5614_v26  ;;  %v5639_v28 = vand.u32 4294901760, %v5622_v3  ;;  %4680 = vmatpush3.msra.mxu0 %v5614_v26  ;;  %v5681_v52 = vsub.f32 %v1995_v37, %v5669_v45  ;;  %v2224_v13 = vsub.f32 %v5667_v40, %v5678_v48 }
 0x1fc   : > { %v1806_v53 = vadd.f32 %v1805_v51, %v1681_v44  ;;  %v1949_v54 = vsel %vm1942_vm2, %v5576_v49, -inf  ;;  %v5591_v6 = vadd.f32 %v4671_v38, %v1812_v50  ;;  %v2197_v30 = vand.u32 4294901760, %v2196_v14  ;;  %4681 = vmatprep.subr.mxu0 %v5635_v25  ;;  %v1992_v50 = vld [vmem:[%s6472_s4 + $0x8] sm:$0xff] }
 0x1fd   : > { %v4658_v59 = vpop.f32.mrf.mxu0  ;;  %1950 = vmax.xlane.f32.xlu1 %v1949_v54  ;;  %1947 = vmax.xlane.f32.xlu0 %v1946_v55  ;;  %v5645_v31 = vand.u32 4294901760, %v5633_v15  ;;  %v2203_v36 = vsub.f32 %v5622_v3, %v5639_v28  ;;  %v5693_v33 = vand.u32 4294901760, %v5681_v52  ;;  %v5699_v44 = vsub.f32 %v1994_v47, %v5684_v4 }
 0x1fe   : > { %v5587_v63 = vadd.f32 %v1920_v11, %v1806_v53  ;;  %v1824_v60 = vadd.f32 %v4658_v59, %v1705_v58  ;;  %v1958_v8 = vsel %vm1942_vm2, %v5591_v6, -inf  ;;  %4707 = vmatprep.subr.mxu1 %v2197_v30  ;;  %4682 = vmatpush3.msra.mxu0 %v5635_v25  ;;  %v2218_v11 = vand.u32 4294901760, %v2217_v43  ;;  %v1991_v58 = vld [vmem:[%s6472_s4] sm:$0xff] }
 0x1ff   : > { %v1817_v2 = vpop.f32.mrf.mxu0  ;;  %v2210_v38 = vsub.f32 %v5633_v15, %v5645_v31  ;;  %4708 = vmatpush3.msra.mxu1 %v2197_v30  ;;  %v2204_v46 = vand.u32 4294901760, %v2203_v36  ;;  %4683 = vmatprep.subr.mxu0 %v5650_v34  ;;  %v2225_v51 = vand.u32 4294901760, %v2224_v13  ;;  %v2231_v53 = vsub.f32 %v5681_v52, %v5693_v33 }
 0x200   : > { %v1818_v1 = vadd.f32 %v1817_v2, %v1697_v62  ;;  %v1955_v19 = vsel %vm1942_vm2, %v5587_v63, -inf  ;;  %v5619_v27 = vadd.f32 %v4674_v56, %v1824_v60  ;;  %4684 = vmatpush3.msra.mxu0 %v5650_v34  ;;  %v5708_v54 = vsub.f32 %v1993_v10, %v5695_v41 }
 0x201   : > { %1953 = vmax.xlane.f32.xlu1 %v1952_v18  ;;  %1956 = vmax.xlane.f32.xlu0 %v1955_v19  ;;  %v2211_v42 = vand.u32 4294901760, %v2210_v38  ;;  %v5710_v55 = vand.u32 4294901760, %v1992_v50  ;;  %v5714_v56 = vand.u32 4294901760, %v5699_v44  ;;  %v2232_v59 = vand.u32 4294901760, %v2231_v53 }
 0x202   : > { %v5609_v23 = vadd.f32 %v1932_v20, %v1818_v1  ;;  %v1964_v35 = vsel %vm1942_vm2, %v5619_v27, -inf  ;;  %4709 = vmatprep.subr.mxu1 %v2204_v46  ;;  %4685 = vmatprep.subr.mxu0 %v5669_v45  ;;  %v5721_v61 = vand.u32 4294901760, %v5708_v54  ;;  %v5726_v60 = vand.u32 4294901760, %v1991_v58 }
 0x203   : > { %4710 = vmatpush3.msra.mxu1 %v2204_v46  ;;  %4686 = vmatpush3.msra.mxu0 %v5669_v45  ;;  %v5724_v62 = vsub.f32 %v1992_v50, %v5710_v55  ;;  %v2238_v2 = vsub.f32 %v5699_v44, %v5714_v56 }
 0x204   : > { %v1961_v12 = vsel %vm1942_vm2, %v5609_v23, -inf  ;;  %4711 = vmatprep.subr.mxu1 %v2211_v42  ;;  %4687 = vmatprep.subr.mxu0 %v5684_v4  ;;  %v2245_v16 = vsub.f32 %v5708_v54, %v5721_v61  ;;  %v5738_v18 = vsub.f32 %v1991_v58, %v5726_v60 }
 0x205   : > { %1959 = vmax.xlane.f32.xlu1 %v1958_v8  ;;  %1962 = vmax.xlane.f32.xlu0 %v1961_v12  ;;  %v5735_v1 = vand.u32 4294901760, %v5724_v62  ;;  %v2239_v19 = vand.u32 4294901760, %v2238_v2 }
 0x206   : > { %4712 = vmatpush3.msra.mxu1 %v2211_v42  ;;  %4688 = vmatpush3.msra.mxu0 %v5684_v4  ;;  %v2246_v20 = vand.u32 4294901760, %v2245_v16  ;;  %v5745_v8 = vand.u32 4294901760, %v5738_v18 }
 0x207   : > { %4713 = vmatprep.subr.mxu1 %v2218_v11  ;;  %4689 = vmatprep.subr.mxu0 %v5695_v41  ;;  %v2252_v22 = vsub.f32 %v5724_v62, %v5735_v1 }
 0x208   : > { %4714 = vmatpush3.msra.mxu1 %v2218_v11  ;;  %4690 = vmatpush3.msra.mxu0 %v5695_v41  ;;  %v2259_v12 = vsub.f32 %v5738_v18, %v5745_v8 }
 0x209   : > { %1965 = vmax.xlane.f32.xlu1 %v1964_v35  ;;  %4715 = vmatprep.subr.mxu1 %v2225_v51  ;;  %v2253_v5 = vand.u32 4294901760, %v2252_v22 }
 0x20a   : > { %4716 = vmatpush3.msra.mxu1 %v2225_v51  ;;  %4691 = vmatprep.subr.mxu0 %v5710_v55  ;;  %v2260_v14 = vand.u32 4294901760, %v2259_v12 }
 0x20b   : > { %4717 = vmatprep.subr.mxu1 %v2232_v59  ;;  %4692 = vmatpush3.msra.mxu0 %v5710_v55 }
 0x20c   : > { %4718 = vmatpush3.msra.mxu1 %v2232_v59  ;;  %4693 = vmatprep.subr.mxu0 %v5726_v60 }
 0x20d   : > { %4719 = vmatprep.subr.mxu1 %v2239_v19  ;;  %4694 = vmatpush3.msra.mxu0 %v5726_v60 }
 0x20e   : > { %4720 = vmatpush3.msra.mxu1 %v2239_v19  ;;  %4739 = vmatprep.subr.mxu0 %v5601_v17 }
 0x20f   : > { %4721 = vmatprep.subr.mxu1 %v2246_v20 }
 0x210   : > { %4722 = vmatpush3.msra.mxu1 %v2246_v20 }
 0x211   : > { %4723 = vmatprep.subr.mxu1 %v2253_v5 }
 0x212   : > { %4724 = vmatpush3.msra.mxu1 %v2253_v5 }
 0x213   : > { %4725 = vmatprep.subr.mxu1 %v2260_v14 }
 0x214   : > { %4726 = vmatpush3.msra.mxu1 %v2260_v14 }
 0x215   : > { %4771 = vmatprep.subr.mxu1 %v5589_v0 }
 0x282   : > { %v1945_v29 = vpop.xlane.xlu0 %1944 }
 0x283   : > { %v1967_v30 = vsub.f32 %v5570_v7, %v1945_v29 }
 0x285   : > { %v1975_v35 = vmul.f32 1.442695, %v1967_v30 }
 0x286   : > { %v1951_v36 = vpop.xlane.xlu1 %1950  ;;  %v1948_v37 = vpop.xlane.xlu0 %1947 }
 0x287   : > { %5084 = vpow2.f32 %v1975_v35  ;;  %v1969_v38 = vsub.f32 %v5576_v49, %v1951_v36  ;;  %v1968_v46 = vsub.f32 %v5574_v9, %v1948_v37 }
 0x289   : > { %v1979_v47 = vmul.f32 1.442695, %v1969_v38  ;;  %v1977_v42 = vmul.f32 1.442695, %v1968_v46 }
 0x28a   : > { %v1954_v43 = vpop.xlane.xlu1 %1953  ;;  %v1957_v10 = vpop.xlane.xlu0 %1956 }
 0x28b   : > { %5086 = vpow2.f32 %v1979_v47  ;;  %v1970_v11 = vsub.f32 %v5582_v57, %v1954_v43  ;;  %v1971_v13 = vsub.f32 %v5587_v63, %v1957_v10 }
 0x28c   : > { %5088 = vpow2.f32 %v1977_v42 }
 0x28d   : > { %v1981_v50 = vmul.f32 1.442695, %v1970_v11  ;;  %v1983_v7 = vmul.f32 1.442695, %v1971_v13 }
 0x28e   : > { %v1960_v51 = vpop.xlane.xlu1 %1959  ;;  %v1963_v53 = vpop.xlane.xlu0 %1962 }
 0x28f   : > { %5090 = vpow2.f32 %v1981_v50  ;;  %v1972_v58 = vsub.f32 %v5591_v6, %v1960_v51  ;;  %v1973_v49 = vsub.f32 %v5609_v23, %v1963_v53 }
 0x290   : > { %5092 = vpow2.f32 %v1983_v7 }
 0x291   : > { %v1985_v9 = vmul.f32 1.442695, %v1972_v58  ;;  %v1987_v59 = vmul.f32 1.442695, %v1973_v49 }
 0x292   : > { %v1966_v2 = vpop.xlane.xlu1 %1965 }
 0x293   : > { %5094 = vpow2.f32 %v1985_v9  ;;  %v1974_v16 = vsub.f32 %v5619_v27, %v1966_v2 }
 0x294   : > { %v5762_v57 = vpop.eup %5084  ;;  %5096 = vpow2.f32 %v1987_v59 }
 0x295   : > { %v1989_v63 = vmul.f32 1.442695, %v1974_v16  ;;  %v2002_v19 = vsel %vm1942_vm2, %v5762_v57, 0 }
 0x296   : > { %v5766_v20 = vand.u32 4294901760, %v2002_v19 }
 0x297   : > { %5098 = vpow2.f32 %v1989_v63 }
 0x298   : > { %v5768_v6 = vpop.eup %5086  ;;  %4727 = vmatprep.mubr.f32.mxu1 %v5766_v20  ;;  %v5772_v23 = vsub.f32 %v2002_v19, %v5766_v20 }
 0x299   : > { %v5774_v22 = vpop.eup %5088  ;;  %v2008_v27 = vsel %vm1942_vm2, %v5768_v6, 0 }
 0x29a   : > { %v2005_v5 = vsel %vm1942_vm2, %v5774_v22, 0  ;;  %v5780_v12 = vand.u32 4294901760, %v2008_v27  ;;  %v2102_v14 = vand.u32 4294901760, %v5772_v23 }
 0x29b   : > { %v5783_v29 = vand.u32 4294901760, %v2005_v5 }
 0x29c   : > { %v5785_v30 = vpop.eup %5090  ;;  %v2103_v35 = vsub.f32 %v5772_v23, %v2102_v14  ;;  %v5791_v36 = vsub.f32 %v2008_v27, %v5780_v12 }
 0x29d   : > { %v5793_v37 = vpop.eup %5092  ;;  %v5796_v38 = vsub.f32 %v2005_v5, %v5783_v29  ;;  %4728 = vmatmul.mubr.f32.vlgmr.msra.gmra.mxu1 %v5783_v29  ;;  %v2011_v46 = vsel %vm1942_vm2, %v5785_v30, 0 }
 0x29e   : > { %4772 = vmatpush3.msra.mxu1 %v5589_v0  ;;  %4730 = vmatprep.mubr.f32.mxu1 %v5780_v12  ;;  %v2104_v47 = vand.u32 4294901760, %v2103_v35  ;;  %v5803_v42 = vand.u32 4294901760, %v2011_v46  ;;  %v2014_v43 = vsel %vm1942_vm2, %v5793_v37, 0  ;;  %v6476_v10 = vand.u32 4294901760, %v5791_v36 }
 0x29f   : > { %4773 = vmatprep.subr.mxu1 %v5604_v21  ;;  %v5809_v11 = vand.u32 4294901760, %v2014_v43  ;;  %v2112_v13 = vand.u32 4294901760, %v5796_v38 }
 0x2a0   : > { %v5812_v50 = vpop.eup %5094  ;;  %4774 = vmatpush3.msra.mxu1 %v5604_v21  ;;  %4695 = vmatprep.mubr.f32.mxu0 %v2104_v47  ;;  %v2123_v7 = vsub.f32 %v5791_v36, %v6476_v10  ;;  %v5819_v51 = vsub.f32 %v2011_v46, %v5803_v42 }
 0x2a1   : > { %v5821_v53 = vpop.eup %5096  ;;  %4775 = vmatprep.subr.mxu1 %v5614_v26  ;;  %4731 = vmatmul.mubr.f32.gmra.mxu1 %v5803_v42  ;;  %v2113_v58 = vsub.f32 %v5796_v38, %v2112_v13  ;;  %v2017_v49 = vsel %vm1942_vm2, %v5812_v50, 0  ;;  %v5831_v9 = vsub.f32 %v2014_v43, %v5809_v11 }
 0x2a2   : > { %4776 = vmatpush3.msra.mxu1 %v5614_v26  ;;  %4733 = vmatprep.mubr.f32.mxu1 %v5809_v11  ;;  %v5835_v59 = vand.u32 4294901760, %v2017_v49  ;;  %v2020_v2 = vsel %vm1942_vm2, %v5821_v53, 0  ;;  %v6475_v16 = vand.u32 4294901760, %v5819_v51  ;;  %v2124_v19 = vand.u32 4294901760, %v2123_v7 }
 0x2a3   : > { %4777 = vmatprep.subr.mxu1 %v5635_v25  ;;  %v2114_v63 = vand.u32 4294901760, %v2113_v58  ;;  %v5841_v27 = vand.u32 4294901760, %v2020_v2  ;;  %v6477_v5 = vand.u32 4294901760, %v5831_v9 }
 0x2a4   : > { %v5844_v35 = vpop.eup %5098  ;;  %4778 = vmatpush3.msra.mxu1 %v5635_v25  ;;  %v2133_v46 = vsub.f32 %v5819_v51, %v6475_v16  ;;  %v5851_v47 = vsub.f32 %v2017_v49, %v5835_v59 }
 0x2a5   : > { %4779 = vmatprep.subr.mxu1 %v5650_v34  ;;  %4696 = vmatmul.mubr.f32.vlgmr.msra.gmra.mxu0 %v2114_v63  ;;  %v2023_v43 = vsel %vm1942_vm2, %v5844_v35, 0  ;;  %v2143_v7 = vsub.f32 %v5831_v9, %v6477_v5  ;;  %v5860_v58 = vsub.f32 %v2020_v2, %v5841_v27 }
 0x2a6   : > { %4734 = vmatmul.mubr.f32.gmra.mxu1 %v5835_v59  ;;  %4740 = vmatpush3.msra.mxu0 %v5601_v17  ;;  %v5864_v16 = vand.u32 4294901760, %v2023_v43  ;;  %v2152_v49 = vand.u32 4294901760, %v5851_v47  ;;  %v2134_v63 = vand.u32 4294901760, %v2133_v46 }
 0x2a7   : > { %4780 = vmatpush3.msra.mxu1 %v5650_v34  ;;  %4698 = vmatprep.mubr.f32.mxu0 %v2124_v19  ;;  %v2162_v10 = vand.u32 4294901760, %v5860_v58  ;;  %v2144_v17 = vand.u32 4294901760, %v2143_v7 }
 0x2a8   : > { %4736 = vmatprep.mubr.f32.mxu1 %v5841_v27  ;;  %4741 = vmatprep.subr.mxu0 %v5622_v3  ;;  %v5872_v2 = vsub.f32 %v2023_v43, %v5864_v16  ;;  %v2153_v5 = vsub.f32 %v5851_v47, %v2152_v49 }
 0x2a9   : > { %4781 = vmatprep.subr.mxu1 %v5669_v45  ;;  %4742 = vmatpush3.msra.mxu0 %v5622_v3  ;;  %v2163_v19 = vsub.f32 %v5860_v58, %v2162_v10 }
 0x2aa   : > { %4782 = vmatpush3.msra.mxu1 %v5669_v45  ;;  %4743 = vmatprep.subr.mxu0 %v5633_v15  ;;  %v2172_v46 = vand.u32 4294901760, %v5872_v2  ;;  %v2154_v3 = vand.u32 4294901760, %v2153_v5 }
 0x2ab   : > { %4783 = vmatprep.subr.mxu1 %v5684_v4  ;;  %4699 = vmatmul.mubr.f32.gmra.mxu0 %v2134_v63  ;;  %v2164_v43 = vand.u32 4294901760, %v2163_v19  ;;  %v2905_v63 = vld [vmem:[%s5992_s26] sm:$0xff] }
 0x2ac   : > { %4737 = vmatmul.mubr.f32.gmra.mxu1 %v5864_v16  ;;  %4744 = vmatpush3.msra.mxu0 %v5633_v15  ;;  %v2173_v7 = vsub.f32 %v5872_v2, %v2172_v46 }
 0x2ad   : > { %4784 = vmatpush3.msra.mxu1 %v5684_v4  ;;  %4701 = vmatprep.mubr.f32.mxu0 %v2144_v17 }
 0x2ae   : > { %4745 = vmatprep.subr.mxu0 %v5648_v32  ;;  %4785 = vmatprep.subr.mxu1 %v5695_v41  ;;  %v2174_v15 = vand.u32 4294901760, %v2173_v7 }
 0x2af   : > { %4791 = vmatprep.mubr.f32.mxu1 %v2102_v14  ;;  %4746 = vmatpush3.msra.mxu0 %v5648_v32  ;;  %v6529_v32 = vand.u32 4294901760, %v5791_v36 }
 0x2b0   : > { %4786 = vmatpush3.msra.mxu1 %v5695_v41  ;;  %4747 = vmatprep.subr.mxu0 %v5667_v40 }
 0x2b1   : > { %4787 = vmatprep.subr.mxu1 %v5710_v55  ;;  %4702 = vmatmul.mubr.f32.gmra.mxu0 %v2154_v3  ;;  %v6103_v3 = vand.u32 4294901760, %v2905_v63 }
 0x2b2   : > { %4748 = vmatpush3.msra.mxu0 %v5667_v40  ;;  %4788 = vmatpush3.msra.mxu1 %v5710_v55  ;;  %v6530_v40 = vand.u32 4294901760, %v5819_v51 }
 0x2b3   : > { %4704 = vmatprep.mubr.f32.mxu0 %v2164_v43  ;;  %4749 = vmatprep.subr.mxu0 %v5681_v52  ;;  %6554 = vst [vmem:[#allocation24_spill] sm:$0xff] %v6103_v3 }
 0x2b4   : > { %4789 = vmatprep.subr.mxu1 %v5726_v60  ;;  %4750 = vmatpush3.msra.mxu0 %v5681_v52 }
 0x2b5   : > { %4790 = vmatpush3.msra.mxu1 %v5726_v60  ;;  %4751 = vmatprep.subr.mxu0 %v5699_v44 }
 0x2b6   : > { %4792 = vmatmul.mubr.f32.vlgmr.msra.gmra.mxu1 %v2112_v13  ;;  %4835 = vmatprep.subr.mxu1 %v5589_v0 }
 0x2b7   : > { %4705 = vmatmul.mubr.f32.gmra.mxu0 %v2174_v15  ;;  %4794 = vmatprep.mubr.f32.mxu1 %v6529_v32  ;;  %v6113_v32 = vsub.f32 %v2905_v63, %v6103_v3 }
 0x2b8   : > { %4752 = vmatpush3.msra.mxu0 %v5699_v44  ;;  %4836 = vmatpush3.msra.mxu1 %v5589_v0  ;;  %v6531_v0 = vand.u32 4294901760, %v5831_v9  ;;  %v2910_v44 = vld [vmem:[%s5992_s26 + $0x28] sm:$0xff] }
 0x2b9   : > { %4753 = vmatprep.subr.mxu0 %v5708_v54  ;;  %4759 = vmatprep.mubr.f32.mxu0 %v5772_v23  ;;  %6556 = vst [vmem:[#allocation26_spill] sm:$0xff] %v6113_v32 }
 0x2ba   : > { %4837 = vmatprep.subr.mxu1 %v5604_v21  ;;  %4754 = vmatpush3.msra.mxu0 %v5708_v54 }
 0x2bb   : > { %4838 = vmatpush3.msra.mxu1 %v5604_v21  ;;  %4755 = vmatprep.subr.mxu0 %v5724_v62  ;;  %v2914_v21 = vld [vmem:[%s5992_s26 + $0x48] sm:$0xff] }
 0x2bc   : > { %4795 = vmatmul.mubr.f32.gmra.mxu1 %v6530_v40  ;;  %4839 = vmatprep.subr.mxu1 %v5614_v26 }
 0x2bd   : > { %4756 = vmatpush3.msra.mxu0 %v5724_v62  ;;  %4797 = vmatprep.mubr.f32.mxu1 %v6531_v0  ;;  %v6039_v62 = vand.u32 4294901760, %v2910_v44 }
 0x2be   : > { %4840 = vmatpush3.msra.mxu1 %v5614_v26  ;;  %4757 = vmatprep.subr.mxu0 %v5738_v18  ;;  %v2913_v26 = vld [vmem:[%s5992_s26 + $0x40] sm:$0xff] }
 0x2bf   : > { %4841 = vmatprep.subr.mxu1 %v5635_v25  ;;  %4758 = vmatpush3.msra.mxu0 %v5738_v18  ;;  %6539 = vst [vmem:[#allocation9_spill] sm:$0xff] %v6039_v62  ;;  %v6051_v23 = vsub.f32 %v2910_v44, %v6039_v62 }
 0x2c0   : > { %4842 = vmatpush3.msra.mxu1 %v5635_v25  ;;  %4760 = vmatmul.mubr.f32.vlgmr.msra.gmra.mxu0 %v5796_v38 }
 0x2c1   : > { %4798 = vmatmul.mubr.f32.gmra.mxu1 %v2152_v49  ;;  %4803 = vmatprep.subr.mxu0 %v5612_v24  ;;  %6542 = vst [vmem:[#allocation12_spill] sm:$0xff] %v6051_v23 }
 0x2c2   : > { %4843 = vmatprep.subr.mxu1 %v5650_v34  ;;  %4762 = vmatprep.mubr.f32.mxu0 %v5791_v36 }
 0x2c3   : > { %4800 = vmatprep.mubr.f32.mxu1 %v2162_v10  ;;  %4804 = vmatpush3.msra.mxu0 %v5612_v24  ;;  %v5995_v24 = vand.u32 4294901760, %v2914_v21  ;;  %v2907_v10 = vld [vmem:[%s5992_s26 + $0x10] sm:$0xff] }
 0x2c4   : > { %4844 = vmatpush3.msra.mxu1 %v5650_v34  ;;  %4805 = vmatprep.subr.mxu0 %v5639_v28 }
 0x2c5   : > { %4845 = vmatprep.subr.mxu1 %v5669_v45  ;;  %4806 = vmatpush3.msra.mxu0 %v5639_v28  ;;  %v5999_v25 = vsub.f32 %v2914_v21, %v5995_v24  ;;  %v6001_v28 = vand.u32 4294901760, %v2913_v26  ;;  %v6120_v21 = vand.u32 4294901760, %v6113_v32 }
 0x2c6   : > { %4846 = vmatpush3.msra.mxu1 %v5669_v45  ;;  %4763 = vmatmul.mubr.f32.gmra.mxu0 %v5819_v51 }
 0x2c7   : > { %4801 = vmatmul.mubr.f32.gmra.mxu1 %v2172_v46  ;;  %4807 = vmatprep.subr.mxu0 %v5645_v31  ;;  %6532 = vst [vmem:[#allocation2_spill] sm:$0xff] %v5999_v25  ;;  %v6007_v34 = vand.u32 4294901760, %v5999_v25  ;;  %6557 = vst [vmem:[#allocation27_spill] sm:$0xff] %v6120_v21 }
 0x2c8   : > { %4847 = vmatprep.subr.mxu1 %v5684_v4  ;;  %4765 = vmatprep.mubr.f32.mxu0 %v5831_v9  ;;  %v6074_v9 = vand.u32 4294901760, %v2907_v10 }
 0x2c9   : > { %4808 = vmatpush3.msra.mxu0 %v5645_v31  ;;  %4848 = vmatpush3.msra.mxu1 %v5684_v4  ;;  %v2912_v31 = vld [vmem:[%s5992_s26 + $0x38] sm:$0xff]  ;;  %6533 = vst [vmem:[#allocation3_spill] sm:$0xff] %v6007_v34  ;;  %v3114_v52 = vsub.f32 %v5999_v25, %v6007_v34 }
 0x2ca   : > { %4855 = vmatprep.mubr.f32.mxu1 %v5766_v20  ;;  %4809 = vmatprep.subr.mxu0 %v5664_v39  ;;  %v6012_v45 = vand.u32 4294901760, %v2912_v31  ;;  %6548 = vst [vmem:[#allocation18_spill] sm:$0xff] %v6074_v9 }
 0x2cb   : > { %4849 = vmatprep.subr.mxu1 %v5695_v41  ;;  %4810 = vmatpush3.msra.mxu0 %v5664_v39  ;;  %v6010_v39 = vsub.f32 %v2913_v26, %v6001_v28  ;;  %v3115_v54 = vand.u32 4294901760, %v3114_v52 }
 0x2cc   : > { %4850 = vmatpush3.msra.mxu1 %v5695_v41  ;;  %4766 = vmatmul.mubr.f32.gmra.mxu0 %v5851_v47  ;;  %v6087_v47 = vsub.f32 %v2907_v10, %v6074_v9 }
 0x2cd   : > { %4811 = vmatprep.subr.mxu0 %v5678_v48  ;;  %4851 = vmatprep.subr.mxu1 %v5710_v55  ;;  %6534 = vst [vmem:[#allocation4_spill] sm:$0xff] %v6010_v39  ;;  %v6020_v4 = vand.u32 4294901760, %v6010_v39 }
 0x2ce   : > { %4768 = vmatprep.mubr.f32.mxu0 %v5860_v58  ;;  %4812 = vmatpush3.msra.mxu0 %v5678_v48  ;;  %v2911_v48 = vld [vmem:[%s5992_s26 + $0x30] sm:$0xff]  ;;  %6550 = vst [vmem:[#allocation20_spill] sm:$0xff] %v6087_v47  ;;  %v6097_v19 = vand.u32 4294901760, %v6087_v47 }
 0x2cf   : > { %4852 = vmatpush3.msra.mxu1 %v5710_v55  ;;  %4813 = vmatprep.subr.mxu0 %v5693_v33  ;;  %6535 = vst [vmem:[#allocation5_spill] sm:$0xff] %v6020_v4  ;;  %v6025_v41 = vand.u32 4294901760, %v2911_v48  ;;  %v3121_v55 = vsub.f32 %v6010_v39, %v6020_v4 }
 0x2d0   : > { %4853 = vmatprep.subr.mxu1 %v5726_v60  ;;  %4814 = vmatpush3.msra.mxu0 %v5693_v33  ;;  %v6023_v33 = vsub.f32 %v2912_v31, %v6012_v45  ;;  %6552 = vst [vmem:[#allocation22_spill] sm:$0xff] %v6097_v19  ;;  %v3163_v7 = vsub.f32 %v6087_v47, %v6097_v19 }
 0x2d1   : > { %4854 = vmatpush3.msra.mxu1 %v5726_v60  ;;  %4769 = vmatmul.mubr.f32.gmra.mxu0 %v5872_v2  ;;  %v2909_v60 = vld [vmem:[%s5992_s26 + $0x20] sm:$0xff]  ;;  %v3177_v31 = vsub.f32 %v6113_v32, %v6120_v21 }
 0x2d2   : > { %4815 = vmatprep.subr.mxu0 %v5714_v56  ;;  %4856 = vmatmul.mubr.f32.vlgmr.msra.gmra.mxu1 %v5783_v29  ;;  %6536 = vst [vmem:[#allocation6_spill] sm:$0xff] %v6023_v33  ;;  %v3164_v40 = vand.u32 4294901760, %v3163_v7 }
 0x2d3   : > { %4816 = vmatpush3.msra.mxu0 %v5714_v56  ;;  %4823 = vmatprep.mubr.f32.mxu0 %v5766_v20  ;;  %v6033_v56 = vand.u32 4294901760, %v6023_v33  ;;  %v6048_v20 = vand.u32 4294901760, %v2909_v60 }
 0x2d4   : > { %4858 = vmatprep.mubr.f32.mxu1 %v5780_v12  ;;  %4817 = vmatprep.subr.mxu0 %v5721_v61 }
 0x2d5   : > { %4818 = vmatpush3.msra.mxu0 %v5721_v61  ;;  %6537 = vst [vmem:[#allocation7_spill] sm:$0xff] %v6033_v56  ;;  %v6036_v61 = vsub.f32 %v2911_v48, %v6025_v41  ;;  %4899 = vmatprep.subr.mxu1 %v3115_v54  ;;  %v3128_v18 = vsub.f32 %v6023_v33, %v6033_v56  ;;  %6541 = vst [vmem:[#allocation11_spill] sm:$0xff] %v6048_v20  ;;  %v3178_v48 = vand.u32 4294901760, %v3177_v31 }
 0x2d6   : > { %4819 = vmatprep.subr.mxu0 %v5735_v1  ;;  %4859 = vmatmul.mubr.f32.gmra.mxu1 %v5803_v42  ;;  %v6058_v36 = vsub.f32 %v2909_v60, %v6048_v20 }
 0x2d7   : > { %4820 = vmatpush3.msra.mxu0 %v5735_v1  ;;  %4861 = vmatprep.mubr.f32.mxu1 %v5809_v11  ;;  %6538 = vst [vmem:[#allocation8_spill] sm:$0xff] %v6036_v61  ;;  %v3122_v1 = vand.u32 4294901760, %v3121_v55  ;;  %v3129_v14 = vand.u32 4294901760, %v3128_v18 }
 0x2d8   : > { %4821 = vmatprep.subr.mxu0 %v5745_v8  ;;  %4900 = vmatpush3.msra.mxu1 %v3115_v54  ;;  %6543 = vst [vmem:[#allocation13_spill] sm:$0xff] %v6058_v36  ;;  %v6069_v13 = vand.u32 4294901760, %v6058_v36 }
 0x2d9   : > { %4822 = vmatpush3.msra.mxu0 %v5745_v8  ;;  %v6046_v8 = vand.u32 4294901760, %v6036_v61  ;;  %4901 = vmatprep.subr.mxu1 %v3122_v1 }
 0x2da   : > { %4824 = vmatmul.mubr.f32.vlgmr.msra.gmra.mxu0 %v5783_v29  ;;  %4862 = vmatmul.mubr.f32.gmra.mxu1 %v5835_v59  ;;  %6546 = vst [vmem:[#allocation16_spill] sm:$0xff] %v6069_v13 }
 0x2db   : > { %4826 = vmatprep.mubr.f32.mxu0 %v5780_v12  ;;  %4864 = vmatprep.mubr.f32.mxu1 %v5841_v27  ;;  %6540 = vst [vmem:[#allocation10_spill] sm:$0xff] %v6046_v8  ;;  %v2908_v12 = vld [vmem:[%s5992_s26 + $0x18] sm:$0xff]  ;;  %v3135_v29 = vsub.f32 %v6036_v61, %v6046_v8 }
 0x2dc   : > { %4867 = vmatprep.subr.mxu0 %v5995_v24  ;;  %v6060_v38 = vand.u32 4294901760, %v2908_v12  ;;  %4902 = vmatpush3.msra.mxu1 %v3122_v1 }
 0x2dd   : > { %4868 = vmatpush3.msra.mxu0 %v5995_v24  ;;  %4903 = vmatprep.subr.mxu1 %v3129_v14 }
 0x2de   : > { %4827 = vmatmul.mubr.f32.gmra.mxu0 %v5803_v42  ;;  %4865 = vmatmul.mubr.f32.gmra.mxu1 %v5864_v16  ;;  %6544 = vst [vmem:[#allocation14_spill] sm:$0xff] %v6060_v38  ;;  %v6064_v42 = vand.u32 4294901760, %v6051_v23  ;;  %v6072_v51 = vsub.f32 %v2908_v12, %v6060_v38 }
 0x2df   : > { %4829 = vmatprep.mubr.f32.mxu0 %v5809_v11  ;;  %4869 = vmatprep.subr.mxu0 %v6001_v28  ;;  %v3136_v11 = vand.u32 4294901760, %v3135_v29 }
 0x2e0   : > { %4870 = vmatpush3.msra.mxu0 %v6001_v28  ;;  %6545 = vst [vmem:[#allocation15_spill] sm:$0xff] %v6064_v42  ;;  %6547 = vst [vmem:[#allocation17_spill] sm:$0xff] %v6072_v51  ;;  %4904 = vmatpush3.msra.mxu1 %v3129_v14  ;;  %v6084_v5 = vand.u32 4294901760, %v6072_v51 }
 0x2e1   : > { %4871 = vmatprep.subr.mxu0 %v6012_v45  ;;  %4905 = vmatprep.subr.mxu1 %v3136_v11 }
 0x2e2   : > { %4830 = vmatmul.mubr.f32.gmra.mxu0 %v5835_v59  ;;  %v3142_v59 = vsub.f32 %v6051_v23, %v6064_v42  ;;  %6549 = vst [vmem:[#allocation19_spill] sm:$0xff] %v6084_v5  ;;  %4906 = vmatpush3.msra.mxu1 %v3136_v11  ;;  %v3156_v17 = vsub.f32 %v6072_v51, %v6084_v5 }
 0x2e3   : > { %4832 = vmatprep.mubr.f32.mxu0 %v5841_v27  ;;  %4872 = vmatpush3.msra.mxu0 %v6012_v45  ;;  %v3149_v27 = vsub.f32 %v6058_v36, %v6069_v13 }
 0x2e4   : > { %4873 = vmatprep.subr.mxu0 %v6025_v41  ;;  %v3143_v49 = vand.u32 4294901760, %v3142_v59  ;;  %v3157_v43 = vand.u32 4294901760, %v3156_v17 }
 0x2e5   : > { %4874 = vmatpush3.msra.mxu0 %v6025_v41  ;;  %v3150_v2 = vand.u32 4294901760, %v3149_v27 }
 0x2e6   : > { %4833 = vmatmul.mubr.f32.gmra.mxu0 %v5864_v16  ;;  %4875 = vmatprep.subr.mxu0 %v6039_v62  ;;  %v2906_v16 = vld [vmem:[%s5992_s26 + $0x8] sm:$0xff] }
 0x2e7   : > { %4876 = vmatpush3.msra.mxu0 %v6039_v62  ;;  %v6089_v58 = vand.u32 4294901760, %v2906_v16  ;;  %4907 = vmatprep.subr.mxu1 %v3143_v49 }
 0x2e8   : > { %4877 = vmatprep.subr.mxu0 %v6048_v20  ;;  %4908 = vmatpush3.msra.mxu1 %v3143_v49 }
 0x2e9   : > { %4878 = vmatpush3.msra.mxu0 %v6048_v20  ;;  %6551 = vst [vmem:[#allocation21_spill] sm:$0xff] %v6089_v58  ;;  %v6100_v46 = vsub.f32 %v2906_v16, %v6089_v58  ;;  %4909 = vmatprep.subr.mxu1 %v3150_v2 }
 0x2ea   : > { %4879 = vmatprep.subr.mxu0 %v6060_v38  ;;  %4910 = vmatpush3.msra.mxu1 %v3150_v2 }
 0x2eb   : > { %4880 = vmatpush3.msra.mxu0 %v6060_v38  ;;  %6553 = vst [vmem:[#allocation23_spill] sm:$0xff] %v6100_v46  ;;  %v6109_v15 = vand.u32 4294901760, %v6100_v46  ;;  %4911 = vmatprep.subr.mxu1 %v3157_v43 }
 0x2ec   : > { %4881 = vmatprep.subr.mxu0 %v6074_v9  ;;  %4912 = vmatpush3.msra.mxu1 %v3157_v43 }
 0x2ed   : > { %4882 = vmatpush3.msra.mxu0 %v6074_v9  ;;  %6555 = vst [vmem:[#allocation25_spill] sm:$0xff] %v6109_v15  ;;  %v3170_v0 = vsub.f32 %v6100_v46, %v6109_v15  ;;  %4913 = vmatprep.subr.mxu1 %v3164_v40 }
 0x2ee   : > { %4883 = vmatprep.subr.mxu0 %v6089_v58  ;;  %4914 = vmatpush3.msra.mxu1 %v3164_v40 }
 0x2ef   : > { %4884 = vmatpush3.msra.mxu0 %v6089_v58  ;;  %v3171_v26 = vand.u32 4294901760, %v3170_v0 }
 0x2f0   : > { %4885 = vmatprep.subr.mxu0 %v6103_v3 }
 0x2f1   : > { %4886 = vmatpush3.msra.mxu0 %v6103_v3  ;;  %4915 = vmatprep.subr.mxu1 %v3171_v26 }
 0x2f2   : > { %4931 = vmatprep.subr.mxu0 %v5999_v25  ;;  %4916 = vmatpush3.msra.mxu1 %v3171_v26 }
 0x2f3   : > { %4917 = vmatprep.subr.mxu1 %v3178_v48 }
 0x2f4   : > { %4918 = vmatpush3.msra.mxu1 %v3178_v48 }
 0x2f5   : > { %4963 = vmatprep.subr.mxu1 %v5995_v24 }
 0x35d   : > { %v4729_v52 = vpop.f32.mrf.mxu1 }
 0x35f   : > { %v2297_v44 = vpop.f32.mrf.mxu1 }
 0x361   : > { %v4732_v54 = vpop.f32.mrf.mxu1 }
 0x363   : > { %v2309_v55 = vpop.f32.mrf.mxu1 }
 0x365   : > { %v4697_v60 = vpop.f32.mrf.mxu0 }
 0x366   : > { %v4735_v18 = vpop.f32.mrf.mxu1  ;;  %v2304_v42 = vadd.f32 %v4729_v52, %v4697_v60 }
 0x367   : > { %v2106_v1 = vpop.f32.mrf.mxu0 }
 0x368   : > { %v2321_v14 = vpop.f32.mrf.mxu1  ;;  %v2298_v4 = vadd.f32 %v2297_v44, %v2106_v1 }
 0x36b   : > { %v4700_v12 = vpop.f32.mrf.mxu0 }
 0x36c   : > { %v4738_v10 = vpop.f32.mrf.mxu1  ;;  %v2316_v46 = vadd.f32 %v4732_v54, %v4700_v12 }
 0x36d   : > { %v2126_v29 = vpop.f32.mrf.mxu0 }
 0x36e   : > { %v2333_v59 = vpop.f32.mrf.mxu1  ;;  %v2310_v36 = vadd.f32 %v2309_v55, %v2126_v29 }
 0x371   : > { %v4703_v11 = vpop.f32.mrf.mxu0 }
 0x372   : > { %v2328_v23 = vadd.f32 %v4735_v18, %v4703_v11 }
 0x373   : > { %v2146_v16 = vpop.f32.mrf.mxu0 }
 0x374   : > { %v2322_v39 = vadd.f32 %v2321_v14, %v2146_v16 }
 0x376   : > { %v4793_v27 = vpop.f32.mrf.mxu1 }
 0x377   : > { %v4706_v63 = vpop.f32.mrf.mxu0 }
 0x378   : > { %v2563_v49 = vpop.f32.mrf.mxu1 }
 0x379   : > { %v2166_v17 = vpop.f32.mrf.mxu0 }
 0x37a   : > { %v2334_v18 = vadd.f32 %v2333_v59, %v2166_v17 }
 0x37c   : > { %v4796_v2 = vpop.f32.mrf.mxu1 }
 0x37e   : > { %v2579_v43 = vpop.f32.mrf.mxu1 }
 0x380   : > { %v4761_v7 = vpop.f32.mrf.mxu0 }
 0x381   : > { %v4799_v0 = vpop.f32.mrf.mxu1  ;;  %v2439_v34 = vadd.f32 %v4761_v7, %v2304_v42  ;;  %v2340_v42 = vadd.f32 %v4738_v10, %v4706_v63 }
 0x382   : > { %v2431_v40 = vpop.f32.mrf.mxu0 }
 0x383   : > { %v2595_v31 = vpop.f32.mrf.mxu1  ;;  %v2432_v47 = vadd.f32 %v2431_v40, %v2298_v4  ;;  %v2572_v58 = vadd.f32 %v4793_v27, %v2439_v34 }
 0x385   : > { %v2564_v20 = vadd.f32 %v2563_v49, %v2432_v47 }
 0x386   : > { %v4764_v26 = vpop.f32.mrf.mxu0 }
 0x387   : > { %v4802_v21 = vpop.f32.mrf.mxu1  ;;  %v2453_v3 = vadd.f32 %v4764_v26, %v2316_v46 }
 0x388   : > { %v2445_v48 = vpop.f32.mrf.mxu0 }
 0x389   : > { %v2611_v19 = vpop.f32.mrf.mxu1  ;;  %v2446_v38 = vadd.f32 %v2445_v48, %v2310_v36  ;;  %v2588_v44 = vadd.f32 %v4796_v2, %v2453_v3 }
 0x38b   : > { %v2580_v34 = vadd.f32 %v2579_v43, %v2446_v38 }
 0x38c   : > { %v4767_v15 = vpop.f32.mrf.mxu0 }
 0x38d   : > { %v2467_v25 = vadd.f32 %v4767_v15, %v2328_v23 }
 0x38e   : > { %v2459_v5 = vpop.f32.mrf.mxu0 }
 0x38f   : > { %v2460_v1 = vadd.f32 %v2459_v5, %v2322_v39  ;;  %v2604_v29 = vadd.f32 %v4799_v0, %v2467_v25 }
 0x391   : > { %v4770_v8 = vpop.f32.mrf.mxu0 }
 0x392   : > { %v4857_v13 = vpop.f32.mrf.mxu1  ;;  %v2481_v36 = vadd.f32 %v4770_v8, %v2340_v42 }
 0x393   : > { %v2473_v51 = vpop.f32.mrf.mxu0 }
 0x394   : > { %v2843_v56 = vpop.f32.mrf.mxu1 }
 0x396   : > { %v4860_v32 = vpop.f32.mrf.mxu1 }
 0x398   : > { %v2855_v9 = vpop.f32.mrf.mxu1 }
 0x39a   : > { %v4825_v61 = vpop.f32.mrf.mxu0  ;;  %v4863_v54 = vpop.f32.mrf.mxu1 }
 0x39b   : > { %v2727_v33 = vadd.f32 %v4825_v61, %v2572_v58 }
 0x39c   : > { %v2720_v52 = vpop.f32.mrf.mxu0  ;;  %v2867_v23 = vpop.f32.mrf.mxu1 }
 0x39d   : > { %v2850_v60 = vadd.f32 %v4857_v13, %v2727_v33  ;;  %v2721_v62 = vadd.f32 %v2720_v52, %v2564_v20  ;;  %v2596_v33 = vadd.f32 %v2595_v31, %v2460_v1  ;;  %v2474_v20 = vadd.f32 %v2473_v51, %v2334_v18 }
 0x39e   : > { %v4828_v4 = vpop.f32.mrf.mxu0  ;;  %v4866_v38 = vpop.f32.mrf.mxu1 }
 0x39f   : > { %5100 = vrcp.f32 %v2850_v60  ;;  %v2844_v55 = vadd.f32 %v2843_v56, %v2721_v62  ;;  %v2739_v46 = vadd.f32 %v4828_v4, %v2588_v44  ;;  %v2620_v62 = vadd.f32 %v4802_v21, %v2481_v36 }
 0x3a0   : > { %v2732_v12 = vpop.f32.mrf.mxu0  ;;  %v2612_v14 = vadd.f32 %v2611_v19, %v2474_v20  ;;  %v2879_v59 = vpop.f32.mrf.mxu1 }
 0x3a1   : > { %5102 = vrcp.f32 %v2844_v55  ;;  %v2862_v61 = vadd.f32 %v4860_v32, %v2739_v46  ;;  %v2733_v47 = vadd.f32 %v2732_v12, %v2580_v34 }
 0x3a2   : > { %v4831_v58 = vpop.f32.mrf.mxu0 }
 0x3a3   : > { %5104 = vrcp.f32 %v2862_v61  ;;  %v2856_v13 = vadd.f32 %v2855_v9, %v2733_v47  ;;  %v2751_v39 = vadd.f32 %v4831_v58, %v2604_v29 }
 0x3a4   : > { %v2744_v5 = vpop.f32.mrf.mxu0 }
 0x3a5   : > { %5106 = vrcp.f32 %v2856_v13  ;;  %v2874_v3 = vadd.f32 %v4863_v54, %v2751_v39  ;;  %v2745_v56 = vadd.f32 %v2744_v5, %v2596_v33  ;;  %v6558_v39 = vld [vmem:[#allocation9_spill] sm:$0xff] }
 0x3a6   : > { %v4834_v15 = vpop.f32.mrf.mxu0 }
 0x3a7   : > { %5108 = vrcp.f32 %v2874_v3  ;;  %v2868_v25 = vadd.f32 %v2867_v23, %v2745_v56  ;;  %v2763_v8 = vadd.f32 %v4834_v15, %v2620_v62  ;;  %v6559_v15 = vld [vmem:[#allocation2_spill] sm:$0xff] }
 0x3a8   : > { %v2756_v32 = vpop.f32.mrf.mxu0 }
 0x3a9   : > { %5110 = vrcp.f32 %v2868_v25  ;;  %v2886_v10 = vadd.f32 %v4866_v38, %v2763_v8  ;;  %v2757_v11 = vadd.f32 %v2756_v32, %v2612_v14  ;;  %v6560_v25 = vld [vmem:[#allocation4_spill] sm:$0xff]  ;;  %v6561_v8 = vld [vmem:[#allocation11_spill] sm:$0xff] }
 0x3ab   : > { %5112 = vrcp.f32 %v2886_v10  ;;  %v2880_v51 = vadd.f32 %v2879_v59, %v2757_v11 }
 0x3ac   : > { %v5101_v9 = vpop.eup %5100 }
 0x3ad   : > { %5114 = vrcp.f32 %v2880_v51  ;;  %v2892_v16 = vmul.f32 %v5101_v9, %v5774_v22  ;;  %v6562_v9 = vld [vmem:[#allocation6_spill] sm:$0xff] }
 0x3ae   : > { %v5103_v27 = vpop.eup %5102 }
 0x3af   : > { %v2890_v21 = vmul.f32 %v5103_v27, %v5762_v57  ;;  %v2923_v49 = vsel %vm1942_vm2, %v2892_v16, 0  ;;  %v6563_v16 = vld [vmem:[#allocation14_spill] sm:$0xff] }
 0x3b0   : > { %v5105_v63 = vpop.eup %5104  ;;  %v6129_v2 = vand.u32 4294901760, %v2923_v49 }
 0x3b1   : > { %v2920_v19 = vsel %vm1942_vm2, %v2890_v21, 0  ;;  %v2896_v17 = vmul.f32 %v5105_v63, %v5785_v30 }
 0x3b2   : > { %v5107_v43 = vpop.eup %5106  ;;  %v6133_v7 = vand.u32 4294901760, %v2920_v19  ;;  %v6136_v40 = vsub.f32 %v2923_v49, %v6129_v2 }
 0x3b3   : > { %v2894_v22 = vmul.f32 %v5107_v43, %v5768_v6  ;;  %v2929_v0 = vsel %vm1942_vm2, %v2896_v17, 0  ;;  %v6565_v17 = vld [vmem:[#allocation18_spill] sm:$0xff] }
 0x3b4   : > { %v5109_v57 = vpop.eup %5108  ;;  %4919 = vmatprep.mubr.f32.mxu1 %v6133_v7  ;;  %v6141_v26 = vand.u32 4294901760, %v2929_v0  ;;  %v6144_v31 = vsub.f32 %v2920_v19, %v6133_v7  ;;  %v3030_v30 = vand.u32 4294901760, %v6136_v40  ;;  %v6564_v19 = vld [vmem:[#allocation8_spill] sm:$0xff] }
 0x3b5   : > { %4920 = vmatmul.mubr.f32.vlgmr.msra.gmra.mxu1 %v6129_v2  ;;  %v2926_v48 = vsel %vm1942_vm2, %v2894_v22, 0  ;;  %v2900_v52 = vmul.f32 %v5109_v57, %v5812_v50  ;;  %v6566_v22 = vld [vmem:[#allocation12_spill] sm:$0xff] }
 0x3b6   : > { %v5111_v60 = vpop.eup %5110  ;;  %4964 = vmatpush3.msra.mxu1 %v5995_v24  ;;  %v6151_v6 = vand.u32 4294901760, %v2926_v48  ;;  %v3020_v44 = vand.u32 4294901760, %v6144_v31  ;;  %v6155_v42 = vsub.f32 %v2929_v0, %v6141_v26  ;;  %v3031_v55 = vsub.f32 %v6136_v40, %v3030_v30  ;;  %v6567_v0 = vld [vmem:[#allocation21_spill] sm:$0xff] }
 0x3b7   : > { %4965 = vmatprep.subr.mxu1 %v6001_v28  ;;  %v2898_v1 = vmul.f32 %v5111_v60, %v5793_v37  ;;  %v2935_v54 = vsel %vm1942_vm2, %v2900_v52, 0  ;;  %v6568_v52 = vld [vmem:[#allocation24_spill] sm:$0xff]  ;;  %v6569_v60 = vld [vmem:[#allocation13_spill] sm:$0xff] }
 0x3b8   : > { %v5113_v4 = vpop.eup %5112  ;;  %4966 = vmatpush3.msra.mxu1 %v6001_v28  ;;  %4922 = vmatprep.mubr.f32.mxu1 %v6151_v6  ;;  %v3021_v50 = vsub.f32 %v6144_v31, %v3020_v44  ;;  %v6168_v46 = vand.u32 4294901760, %v2935_v54  ;;  %v6171_v34 = vsub.f32 %v2926_v48, %v6151_v6  ;;  %v3050_v47 = vand.u32 4294901760, %v6155_v42 }
 0x3b9   : > { %4967 = vmatprep.subr.mxu1 %v6012_v45  ;;  %4923 = vmatmul.mubr.f32.gmra.mxu1 %v6141_v26  ;;  %v2932_v37 = vsel %vm1942_vm2, %v2898_v1, 0  ;;  %v2904_v18 = vmul.f32 %v5113_v4, %v5844_v35  ;;  %v3032_v35 = vand.u32 4294901760, %v3031_v55  ;;  %v6570_v1 = vld [vmem:[#allocation17_spill] sm:$0xff]  ;;  %v6580_v4 = vld [vmem:[#allocation19_spill] sm:$0xff] }
 0x3ba   : > { %v5115_v12 = vpop.eup %5114  ;;  %4968 = vmatpush3.msra.mxu1 %v6012_v45  ;;  %v3022_v29 = vand.u32 4294901760, %v3021_v50  ;;  %v6178_v36 = vand.u32 4294901760, %v2932_v37  ;;  %v3040_v61 = vand.u32 4294901760, %v6171_v34  ;;  %v6193_v13 = vsub.f32 %v2935_v54, %v6168_v46  ;;  %v6571_v54 = vld [vmem:[#allocation20_spill] sm:$0xff]  ;;  %v6581_v50 = vld [vmem:[#allocation22_spill] sm:$0xff]  ;;  %v6582_v55 = vld [vmem:[#allocation25_spill] sm:$0xff] }
 0x3bb   : > { %4969 = vmatprep.subr.mxu1 %v6025_v41  ;;  %v2902_v23 = vmul.f32 %v5115_v12, %v5821_v53  ;;  %v2941_v58 = vsel %vm1942_vm2, %v2904_v18, 0  ;;  %v3051_v62 = vsub.f32 %v6155_v42, %v3050_v47 }
 0x3bc   : > { %4970 = vmatpush3.msra.mxu1 %v6025_v41  ;;  %4887 = vmatprep.mubr.f32.mxu0 %v3022_v29  ;;  %v3041_v33 = vsub.f32 %v6171_v34, %v3040_v61  ;;  %v6190_v20 = vsub.f32 %v2932_v37, %v6178_v36  ;;  %v6198_v5 = vand.u32 4294901760, %v2941_v58  ;;  %v3070_v32 = vand.u32 4294901760, %v6193_v13 }
 0x3bd   : > { %4925 = vmatprep.mubr.f32.mxu1 %v6178_v36  ;;  %4971 = vmatprep.subr.mxu1 %v6558_v39  ;;  %v2938_v53 = vsel %vm1942_vm2, %v2902_v23, 0  ;;  %v3052_v59 = vand.u32 4294901760, %v3051_v62 }
 0x3be   : > { %4888 = vmatmul.mubr.f32.vlgmr.msra.gmra.mxu0 %v3032_v35  ;;  %4926 = vmatmul.mubr.f32.gmra.mxu1 %v6168_v46  ;;  %v3042_v3 = vand.u32 4294901760, %v3041_v33  ;;  %v6201_v56 = vand.u32 4294901760, %v2938_v53  ;;  %v3060_v38 = vand.u32 4294901760, %v6190_v20  ;;  %v6219_v11 = vsub.f32 %v2941_v58, %v6198_v5 }
 0x3bf   : > { %4932 = vmatpush3.msra.mxu0 %v6559_v15  ;;  %4972 = vmatpush3.msra.mxu1 %v6558_v39  ;;  %v3071_v21 = vsub.f32 %v6193_v13, %v3070_v32 }
 0x3c0   : > { %4933 = vmatprep.subr.mxu0 %v6560_v25  ;;  %4973 = vmatprep.subr.mxu1 %v6561_v8  ;;  %v3061_v14 = vsub.f32 %v6190_v20, %v3060_v38  ;;  %v6214_v10 = vsub.f32 %v2938_v53, %v6201_v56  ;;  %v3090_v63 = vand.u32 4294901760, %v6219_v11 }
 0x3c1   : > { %4934 = vmatpush3.msra.mxu0 %v6560_v25  ;;  %4974 = vmatpush3.msra.mxu1 %v6561_v8  ;;  %v3072_v43 = vand.u32 4294901760, %v3071_v21 }
 0x3c2   : > { %4890 = vmatprep.mubr.f32.mxu0 %v3042_v3  ;;  %4928 = vmatprep.mubr.f32.mxu1 %v6201_v56  ;;  %v3080_v51 = vand.u32 4294901760, %v6214_v10  ;;  %v3062_v27 = vand.u32 4294901760, %v3061_v14  ;;  %v3091_v48 = vsub.f32 %v6219_v11, %v3090_v63 }
 0x3c3   : > { %4935 = vmatprep.subr.mxu0 %v6562_v9  ;;  %4975 = vmatprep.subr.mxu1 %v6563_v16 }
 0x3c4   : > { %4891 = vmatmul.mubr.f32.gmra.mxu0 %v3052_v59  ;;  %4929 = vmatmul.mubr.f32.gmra.mxu1 %v6198_v5  ;;  %v3081_v49 = vsub.f32 %v6214_v10, %v3080_v51 }
 0x3c5   : > { %4936 = vmatpush3.msra.mxu0 %v6562_v9  ;;  %4976 = vmatpush3.msra.mxu1 %v6563_v16 }
 0x3c6   : > { %4937 = vmatprep.subr.mxu0 %v6564_v19  ;;  %4977 = vmatprep.subr.mxu1 %v6565_v17  ;;  %v3082_v57 = vand.u32 4294901760, %v3081_v49 }
 0x3c7   : > { %4983 = vmatprep.mubr.f32.mxu1 %v3020_v44  ;;  %4938 = vmatpush3.msra.mxu0 %v6564_v19  ;;  %v3092_v44 = vand.u32 4294901760, %v3091_v48 }
 0x3c8   : > { %4978 = vmatpush3.msra.mxu1 %v6565_v17  ;;  %4893 = vmatprep.mubr.f32.mxu0 %v3062_v27 }
 0x3c9   : > { %4939 = vmatprep.subr.mxu0 %v6566_v22  ;;  %4979 = vmatprep.subr.mxu1 %v6567_v0 }
 0x3ca   : > { %4894 = vmatmul.mubr.f32.gmra.mxu0 %v3072_v43  ;;  %4980 = vmatpush3.msra.mxu1 %v6567_v0 }
 0x3cb   : > { %4940 = vmatpush3.msra.mxu0 %v6566_v22  ;;  %4981 = vmatprep.subr.mxu1 %v6568_v52 }
 0x3cc   : > { %4941 = vmatprep.subr.mxu0 %v6569_v60  ;;  %4982 = vmatpush3.msra.mxu1 %v6568_v52 }
 0x3cd   : > { %4942 = vmatpush3.msra.mxu0 %v6569_v60  ;;  %4896 = vmatprep.mubr.f32.mxu0 %v3082_v57 }
 0x3ce   : > { %4943 = vmatprep.subr.mxu0 %v6570_v1  ;;  %4984 = vmatmul.mubr.f32.vlgmr.msra.gmra.mxu1 %v3030_v30  ;;  %v6572_v30 = vld [vmem:[#allocation23_spill] sm:$0xff] }
 0x3cf   : > { %5027 = vmatprep.subr.mxu1 %v5995_v24  ;;  %4897 = vmatmul.mubr.f32.gmra.mxu0 %v3092_v44 }
 0x3d0   : > { %4944 = vmatpush3.msra.mxu0 %v6570_v1  ;;  %4986 = vmatprep.mubr.f32.mxu1 %v3040_v61 }
 0x3d1   : > { %5028 = vmatpush3.msra.mxu1 %v5995_v24  ;;  %4945 = vmatprep.subr.mxu0 %v6571_v54  ;;  %v6573_v24 = vld [vmem:[#allocation26_spill] sm:$0xff] }
 0x3d2   : > { %4951 = vmatprep.mubr.f32.mxu0 %v6144_v31  ;;  %5029 = vmatprep.subr.mxu1 %v6001_v28  ;;  %v6578_v31 = vld [vmem:[#allocation15_spill] sm:$0xff] }
 0x3d3   : > { %4946 = vmatpush3.msra.mxu0 %v6571_v54  ;;  %5030 = vmatpush3.msra.mxu1 %v6001_v28  ;;  %v6574_v28 = vld [vmem:[#allocation3_spill] sm:$0xff] }
 0x3d4   : > { %4947 = vmatprep.subr.mxu0 %v6572_v30  ;;  %4987 = vmatmul.mubr.f32.gmra.mxu1 %v3050_v47 }
 0x3d5   : > { %5031 = vmatprep.subr.mxu1 %v6012_v45  ;;  %4948 = vmatpush3.msra.mxu0 %v6572_v30 }
 0x3d6   : > { %4989 = vmatprep.mubr.f32.mxu1 %v3060_v38  ;;  %5032 = vmatpush3.msra.mxu1 %v6012_v45  ;;  %v6575_v45 = vld [vmem:[#allocation5_spill] sm:$0xff] }
 0x3d7   : > { %4949 = vmatprep.subr.mxu0 %v6573_v24  ;;  %5033 = vmatprep.subr.mxu1 %v6025_v41 }
 0x3d8   : > { %4950 = vmatpush3.msra.mxu0 %v6573_v24  ;;  %5034 = vmatpush3.msra.mxu1 %v6025_v41  ;;  %v6576_v41 = vld [vmem:[#allocation7_spill] sm:$0xff] }
 0x3d9   : > { %4952 = vmatmul.mubr.f32.vlgmr.msra.gmra.mxu0 %v6136_v40  ;;  %4990 = vmatmul.mubr.f32.gmra.mxu1 %v3070_v32  ;;  %v6577_v40 = vld [vmem:[#allocation10_spill] sm:$0xff] }
 0x3da   : > { %4995 = vmatprep.subr.mxu0 %v6574_v28  ;;  %5035 = vmatprep.subr.mxu1 %v6558_v39 }
 0x3db   : > { %4954 = vmatprep.mubr.f32.mxu0 %v6171_v34  ;;  %4992 = vmatprep.mubr.f32.mxu1 %v3080_v51  ;;  %v6583_v34 = vld [vmem:[#allocation27_spill] sm:$0xff] }
 0x3dc   : > { %4996 = vmatpush3.msra.mxu0 %v6574_v28  ;;  %5036 = vmatpush3.msra.mxu1 %v6558_v39 }
 0x3dd   : > { %4997 = vmatprep.subr.mxu0 %v6575_v45  ;;  %5037 = vmatprep.subr.mxu1 %v6561_v8 }
 0x3de   : > { %4998 = vmatpush3.msra.mxu0 %v6575_v45  ;;  %5038 = vmatpush3.msra.mxu1 %v6561_v8 }
 0x3df   : > { %4955 = vmatmul.mubr.f32.gmra.mxu0 %v6155_v42  ;;  %4993 = vmatmul.mubr.f32.gmra.mxu1 %v3090_v63  ;;  %v6579_v42 = vld [vmem:[#allocation16_spill] sm:$0xff] }
 0x3e0   : > { %4999 = vmatprep.subr.mxu0 %v6576_v41  ;;  %5039 = vmatprep.subr.mxu1 %v6563_v16 }
 0x3e1   : > { %4957 = vmatprep.mubr.f32.mxu0 %v6190_v20  ;;  %5000 = vmatpush3.msra.mxu0 %v6576_v41 }
 0x3e2   : > { %5040 = vmatpush3.msra.mxu1 %v6563_v16  ;;  %5047 = vmatprep.mubr.f32.mxu1 %v6133_v7 }
 0x3e3   : > { %5001 = vmatprep.subr.mxu0 %v6577_v40  ;;  %5041 = vmatprep.subr.mxu1 %v6565_v17 }
 0x3e4   : > { %5002 = vmatpush3.msra.mxu0 %v6577_v40  ;;  %5042 = vmatpush3.msra.mxu1 %v6565_v17 }
 0x3e5   : > { %4958 = vmatmul.mubr.f32.gmra.mxu0 %v6193_v13  ;;  %5003 = vmatprep.subr.mxu0 %v6578_v31 }
 0x3e6   : > { %5043 = vmatprep.subr.mxu1 %v6567_v0  ;;  %4960 = vmatprep.mubr.f32.mxu0 %v6214_v10 }
 0x3e7   : > { %5004 = vmatpush3.msra.mxu0 %v6578_v31  ;;  %5044 = vmatpush3.msra.mxu1 %v6567_v0 }
 0x3e8   : > { %5005 = vmatprep.subr.mxu0 %v6579_v42  ;;  %5045 = vmatprep.subr.mxu1 %v6568_v52 }
 0x3e9   : > { %5006 = vmatpush3.msra.mxu0 %v6579_v42  ;;  %5046 = vmatpush3.msra.mxu1 %v6568_v52 }
 0x3ea   : > { %4961 = vmatmul.mubr.f32.gmra.mxu0 %v6219_v11  ;;  %5007 = vmatprep.subr.mxu0 %v6580_v4 }
 0x3eb   : > { %5048 = vmatmul.mubr.f32.vlgmr.msra.gmra.mxu1 %v6129_v2  ;;  %5008 = vmatpush3.msra.mxu0 %v6580_v4 }
 0x3ec   : > { %5015 = vmatprep.mubr.f32.mxu0 %v6133_v7  ;;  %5050 = vmatprep.mubr.f32.mxu1 %v6151_v6  ;;  %v2915_v7 = vlaneseq }
 0x3ed   : > { %5009 = vmatprep.subr.mxu0 %v6581_v50 }
 0x3ee   : > { %5010 = vmatpush3.msra.mxu0 %v6581_v50  ;;  %v2916_v37 = vshrl.u32 %v2915_v7, 7 }
 0x3ef   : > { %5011 = vmatprep.subr.mxu0 %v6582_v55  ;;  %5051 = vmatmul.mubr.f32.gmra.mxu1 %v6141_v26 }
 0x3f0   : > { %5012 = vmatpush3.msra.mxu0 %v6582_v55  ;;  %5053 = vmatprep.mubr.f32.mxu1 %v6178_v36  ;;  %v3965_v18 = vsub.s32 2, %v2916_v37  ;;  %v2917_v10 = vsub.s32 0, %v2916_v37 }
 0x3f1   : > { %5013 = vmatprep.subr.mxu0 %v6583_v34 }
 0x3f2   : > { %5014 = vmatpush3.msra.mxu0 %v6583_v34 }
 0x3f3   : > { %5016 = vmatmul.mubr.f32.vlgmr.msra.gmra.mxu0 %v6129_v2  ;;  %5054 = vmatmul.mubr.f32.gmra.mxu1 %v6168_v46  ;;  %v3953_v2 = vsub.s32 1, %v2916_v37 }
 0x3f4   : > { %5018 = vmatprep.mubr.f32.mxu0 %v6151_v6  ;;  %5056 = vmatprep.mubr.f32.mxu1 %v6201_v56  ;;  %v339_v6 = vld [vmem:[%s6473_s5] sm:$0x7] }
 0x3f5   : > { %v6327_v12 = vrot.slane %v339_v6, %v3953_v2  ;;  %v2918_v51 = vrot.slane %v339_v6, %v2917_v10 }
 0x3f7   : > { %5019 = vmatmul.mubr.f32.gmra.mxu0 %v6141_v26  ;;  %5057 = vmatmul.mubr.f32.gmra.mxu1 %v6198_v5  ;;  %v6329_v26 = vrot.slane %v339_v6, %v3965_v18 }
 0x3f8   : > { %5021 = vmatprep.mubr.f32.mxu0 %v6178_v36 }
 0x3fb   : > { %5022 = vmatmul.mubr.f32.gmra.mxu0 %v6168_v46 }
 0x3fc   : > { %5024 = vmatprep.mubr.f32.mxu0 %v6201_v56 }
 0x3ff   : > { %5025 = vmatmul.mubr.f32.gmra.mxu0 %v6198_v5 }
 0x475   : > { %v4921_v29 = vpop.f32.mrf.mxu1 }
 0x477   : > { %v3215_v36 = vpop.f32.mrf.mxu1 }
 0x479   : > { %v4924_v61 = vpop.f32.mrf.mxu1 }
 0x47b   : > { %v3227_v46 = vpop.f32.mrf.mxu1 }
 0x47e   : > { %v4889_v47 = vpop.f32.mrf.mxu0  ;;  %v4927_v58 = vpop.f32.mrf.mxu1 }
 0x47f   : > { %v3035_v27 = vadd.f32 %v4889_v47, %v2918_v51 }
 0x480   : > { %v3024_v23 = vpop.f32.mrf.mxu0  ;;  %v3239_v33 = vpop.f32.mrf.mxu1 }
 0x481   : > { %v3025_v63 = vadd.f32 %v3024_v23, %v2918_v51  ;;  %v3222_v17 = vadd.f32 %v4921_v29, %v3035_v27 }
 0x483   : > { %v3216_v48 = vadd.f32 %v3215_v36, %v3025_v63 }
 0x484   : > { %v4892_v35 = vpop.f32.mrf.mxu0  ;;  %v6331_v13 = vpop.f32.mrf.mxu1 }
 0x485   : > { %v3055_v19 = vadd.f32 %v4892_v35, %v2918_v51 }
 0x486   : > { %v3044_v20 = vpop.f32.mrf.mxu0  ;;  %v6333_v53 = vpop.f32.mrf.mxu1 }
 0x487   : > { %v3045_v0 = vadd.f32 %v3044_v20, %v2918_v51  ;;  %v3234_v1 = vadd.f32 %v4924_v61, %v3055_v19 }
 0x489   : > { %v3228_v24 = vadd.f32 %v3227_v46, %v3045_v0 }
 0x48a   : > { %v4895_v39 = vpop.f32.mrf.mxu0 }
 0x48b   : > { %v3075_v60 = vadd.f32 %v4895_v39, %v2918_v51 }
 0x48c   : > { %v3064_v5 = vpop.f32.mrf.mxu0 }
 0x48d   : > { %v3065_v41 = vadd.f32 %v3064_v5, %v2918_v51  ;;  %v3246_v40 = vadd.f32 %v4927_v58, %v3075_v60  ;;  %v5134_v60 = vld [vmem:[%s5269_s12 + $0x18] sm:$0xff] }
 0x48e   : > { %v4985_v3 = vpop.f32.mrf.mxu1 }
 0x48f   : > { %v4898_v56 = vpop.f32.mrf.mxu0  ;;  %v3240_v29 = vadd.f32 %v3239_v33, %v3065_v41 }
 0x490   : > { %v3481_v62 = vpop.f32.mrf.mxu1  ;;  %v3095_v6 = vadd.f32 %v4898_v56, %v2918_v51 }
 0x491   : > { %v3084_v38 = vpop.f32.mrf.mxu0 }
 0x492   : > { %v3085_v35 = vadd.f32 %v3084_v38, %v2918_v51  ;;  %v3258_v56 = vadd.f32 %v6331_v13, %v3095_v6  ;;  %v5133_v51 = vld [vmem:[%s5269_s12] sm:$0xff] }
 0x494   : > { %v4988_v15 = vpop.f32.mrf.mxu1  ;;  %v3252_v13 = vadd.f32 %v6333_v53, %v3085_v35 }
 0x496   : > { %v3497_v14 = vpop.f32.mrf.mxu1 }
 0x499   : > { %v4953_v25 = vpop.f32.mrf.mxu0  ;;  %v4991_v11 = vpop.f32.mrf.mxu1 }
 0x49a   : > { %v3357_v57 = vadd.f32 %v4953_v25, %v3222_v17 }
 0x49b   : > { %v3349_v8 = vpop.f32.mrf.mxu0  ;;  %v3513_v9 = vpop.f32.mrf.mxu1 }
 0x49c   : > { %v3350_v44 = vadd.f32 %v3349_v8, %v3216_v48  ;;  %v3490_v45 = vadd.f32 %v4985_v3, %v3357_v57  ;;  %v5132_v8 = vld [vmem:[%s5269_s12 + $0x8] sm:$0xff] }
 0x49e   : > { %v3482_v50 = vadd.f32 %v3481_v62, %v3350_v44 }
 0x49f   : > { %v4956_v32 = vpop.f32.mrf.mxu0  ;;  %v6335_v21 = vpop.f32.mrf.mxu1 }
 0x4a0   : > { %v3371_v30 = vadd.f32 %v4956_v32, %v3234_v1 }
 0x4a1   : > { %v3363_v59 = vpop.f32.mrf.mxu0  ;;  %v6337_v43 = vpop.f32.mrf.mxu1 }
 0x4a2   : > { %v3364_v42 = vadd.f32 %v3363_v59, %v3228_v24  ;;  %v3506_v18 = vadd.f32 %v4988_v15, %v3371_v30 }
 0x4a4   : > { %v3498_v23 = vadd.f32 %v3497_v14, %v3364_v42 }
 0x4a5   : > { %v4959_v16 = vpop.f32.mrf.mxu0 }
 0x4a6   : > { %v3385_v55 = vadd.f32 %v4959_v16, %v3246_v40 }
 0x4a7   : > { %v3377_v49 = vpop.f32.mrf.mxu0 }
 0x4a8   : > { %v3378_v58 = vadd.f32 %v3377_v49, %v3240_v29  ;;  %v3522_v39 = vadd.f32 %v4991_v11, %v3385_v55 }
 0x4aa   : > { %v4962_v22 = vpop.f32.mrf.mxu0  ;;  %v3514_v14 = vadd.f32 %v3513_v9, %v3378_v58 }
 0x4ab   : > { %v5049_v52 = vpop.f32.mrf.mxu1  ;;  %v3399_v49 = vadd.f32 %v4962_v22, %v3258_v56 }
 0x4ac   : > { %v3391_v54 = vpop.f32.mrf.mxu0 }
 0x4ad   : > { %v3761_v28 = vpop.f32.mrf.mxu1  ;;  %v3392_v22 = vadd.f32 %v3391_v54, %v3252_v13  ;;  %v3538_v1 = vadd.f32 %v6335_v21, %v3399_v49 }
 0x4af   : > { %v5052_v7 = vpop.f32.mrf.mxu1 }
 0x4b1   : > { %v3773_v5 = vpop.f32.mrf.mxu1 }
 0x4b3   : > { %v5017_v31 = vpop.f32.mrf.mxu0  ;;  %v5055_v63 = vpop.f32.mrf.mxu1 }
 0x4b4   : > { %v3645_v4 = vadd.f32 %v5017_v31, %v3490_v45 }
 0x4b5   : > { %v3638_v34 = vpop.f32.mrf.mxu0  ;;  %v3785_v53 = vpop.f32.mrf.mxu1 }
 0x4b6   : > { %v3768_v37 = vadd.f32 %v5049_v52, %v3645_v4  ;;  %v3639_v2 = vadd.f32 %v3638_v34, %v3482_v50  ;;  %v3530_v4 = vadd.f32 %v6337_v43, %v3392_v22 }
 0x4b7   : > { %v5020_v36 = vpop.f32.mrf.mxu0  ;;  %v5058_v21 = vpop.f32.mrf.mxu1 }
 0x4b8   : > { %v3808_v61 = vmax.f32 %v3768_v37, 0.0  ;;  %v3762_v46 = vadd.f32 %v3761_v28, %v3639_v2  ;;  %v3657_v47 = vadd.f32 %v5020_v36, %v3506_v18  ;;  %v5135_v28 = vld [vmem:[%s5269_s12 + $0x10] sm:$0xff]  ;;  %v5136_v18 = vld [vmem:[%s5269_s12 + $0x28] sm:$0xff] }
 0x4b9   : > { %v3650_v20 = vpop.f32.mrf.mxu0  ;;  %v3797_v43 = vpop.f32.mrf.mxu1 }
 0x4ba   : > { %v3807_v3 = vmax.f32 %v3762_v46, 0.0  ;;  %v3780_v62 = vadd.f32 %v5052_v7, %v3657_v47  ;;  %v3651_v25 = vadd.f32 %v3650_v20, %v3498_v23  ;;  %v6340_v32 = vadd.f32 %v5132_v8, %v3808_v61  ;;  %v5137_v61 = vld [vmem:[%s5269_s12 + $0x20] sm:$0xff]  ;;  %v5139_v8 = vld [vmem:[%s5269_s12 + $0x30] sm:$0xff] }
 0x4bb   : > { %v5023_v33 = vpop.f32.mrf.mxu0 }
 0x4bc   : > { %v3810_v15 = vmax.f32 %v3780_v62, 0.0  ;;  %v3774_v10 = vadd.f32 %v3773_v5, %v3651_v25  ;;  %v3669_v59 = vadd.f32 %v5023_v33, %v3522_v39  ;;  %v3826_v38 = vsel %vm344_vm0, %v6340_v32, 0.0 }
 0x4bd   : > { %3827 = vadd.xlane.f32.xlu1 %v3826_v38  ;;  %v3662_v11 = vpop.f32.mrf.mxu0  ;;  %v6346_v16 = vadd.f32 %v5133_v51, %v3807_v3  ;;  %v3848_v27 = vmul.f32 %v6340_v32, %v6340_v32  ;;  %v5138_v3 = vld [vmem:[%s5269_s12 + $0x38] sm:$0xff] }
 0x4be   : > { %v3809_v19 = vmax.f32 %v3774_v10, 0.0  ;;  %v3663_v17 = vadd.f32 %v3662_v11, %v3514_v14  ;;  %v3792_v57 = vadd.f32 %v5055_v63, %v3669_v59  ;;  %v6357_v44 = vadd.f32 %v5134_v60, %v3810_v15 }
 0x4bf   : > { %v3823_v0 = vsel %vm344_vm0, %v6346_v16, 0.0  ;;  %v3847_v9 = vmul.f32 %v6346_v16, %v6346_v16  ;;  %v5026_v48 = vpop.f32.mrf.mxu0  ;;  %v3858_v52 = vsel %vm344_vm0, %v3848_v27, 0.0 }
 0x4c0   : > { %3824 = vadd.xlane.f32.xlu0 %v3823_v0  ;;  %v3786_v30 = vadd.f32 %v3785_v53, %v3663_v17  ;;  %v6362_v45 = vadd.f32 %v5135_v28, %v3809_v19  ;;  %v3812_v41 = vmax.f32 %v3792_v57, 0.0  ;;  %v3681_v40 = vadd.f32 %v5026_v48, %v3538_v1 }
 0x4c1   : > { %3859 = vadd.xlane.f32.xlu1 %v3858_v52  ;;  %v3855_v24 = vsel %vm344_vm0, %v3847_v9, 0.0  ;;  %v3674_v31 = vpop.f32.mrf.mxu0  ;;  %v3832_v42 = vsel %vm344_vm0, %v6357_v44, 0.0  ;;  %v3850_v54 = vmul.f32 %v6357_v44, %v6357_v44 }
 0x4c2   : > { %v3811_v50 = vmax.f32 %v3786_v30, 0.0  ;;  %v3675_v55 = vadd.f32 %v3674_v31, %v3530_v4  ;;  %v3829_v34 = vsel %vm344_vm0, %v6362_v45, 0.0  ;;  %v3849_v7 = vmul.f32 %v6362_v45, %v6362_v45 }
 0x4c3   : > { %v3804_v37 = vadd.f32 %v5058_v21, %v3681_v40  ;;  %v3864_v2 = vsel %vm344_vm0, %v3850_v54, 0.0  ;;  %v6375_v6 = vadd.f32 %v5136_v18, %v3812_v41 }
 0x4c4   : > { %3856 = vadd.xlane.f32.xlu0 %v3855_v24  ;;  %v3798_v29 = vadd.f32 %v3797_v43, %v3675_v55  ;;  %v3861_v36 = vsel %vm344_vm0, %v3849_v7, 0.0  ;;  %v6379_v46 = vadd.f32 %v5137_v61, %v3811_v50 }
 0x4c5   : > { %3833 = vadd.xlane.f32.xlu1 %v3832_v42  ;;  %v3814_v47 = vmax.f32 %v3804_v37, 0.0  ;;  %v3838_v23 = vsel %vm344_vm0, %v6375_v6, 0.0  ;;  %v3852_v35 = vmul.f32 %v6375_v6, %v6375_v6 }
 0x4c6   : > { %v3813_v58 = vmax.f32 %v3798_v29, 0.0  ;;  %v3835_v20 = vsel %vm344_vm0, %v6379_v46, 0.0  ;;  %v3851_v39 = vmul.f32 %v6379_v46, %v6379_v46 }
 0x4c7   : > { %v3870_v5 = vsel %vm344_vm0, %v3852_v35, 0.0  ;;  %v6391_v62 = vadd.f32 %v5138_v3, %v3814_v47 }
 0x4c8   : > { %3830 = vadd.xlane.f32.xlu0 %v3829_v34  ;;  %v3867_v25 = vsel %vm344_vm0, %v3851_v39, 0.0  ;;  %v6395_v56 = vadd.f32 %v5139_v8, %v3813_v58 }
 0x4c9   : > { %3865 = vadd.xlane.f32.xlu1 %v3864_v2  ;;  %v3844_v33 = vsel %vm344_vm0, %v6391_v62, 0.0  ;;  %v3854_v15 = vmul.f32 %v6391_v62, %v6391_v62 }
 0x4ca   : > { %v3841_v10 = vsel %vm344_vm0, %v6395_v56, 0.0  ;;  %v3853_v59 = vmul.f32 %v6395_v56, %v6395_v56 }
 0x4cb   : > { %v3876_v38 = vsel %vm344_vm0, %v3854_v15, 0.0 }
 0x4cc   : > { %3862 = vadd.xlane.f32.xlu0 %v3861_v36  ;;  %v3873_v14 = vsel %vm344_vm0, %v3853_v59, 0.0 }
 0x4cd   : > { %3839 = vadd.xlane.f32.xlu1 %v3838_v23 }
 0x4d0   : > { %3836 = vadd.xlane.f32.xlu0 %v3835_v20 }
 0x4d1   : > { %3871 = vadd.xlane.f32.xlu1 %v3870_v5 }
 0x4d4   : > { %3868 = vadd.xlane.f32.xlu0 %v3867_v25 }
 0x4d5   : > { %3845 = vadd.xlane.f32.xlu1 %v3844_v33 }
 0x4d8   : > { %3842 = vadd.xlane.f32.xlu0 %v3841_v10 }
 0x4d9   : > { %3877 = vadd.xlane.f32.xlu1 %v3876_v38 }
 0x4dc   : > { %3874 = vadd.xlane.f32.xlu0 %v3873_v14 }
 0x546   : > { %v3828_v11 = vpop.xlane.xlu1 %3827 }
 0x547   : > { %v3880_v51 = vmul.f32 0.03125, %v3828_v11 }
 0x549   : > { %v3825_v27 = vpop.xlane.xlu0 %3824  ;;  %v3896_v63 = vmul.f32 %v3880_v51, %v3880_v51  ;;  %v3920_v29 = vsub.f32 %v6340_v32, %v3880_v51 }
 0x54a   : > { %v3879_v49 = vmul.f32 0.03125, %v3825_v27  ;;  %v3860_v13 = vpop.xlane.xlu1 %3859 }
 0x54b   : > { %v3888_v19 = vmul.f32 0.03125, %v3860_v13 }
 0x54c   : > { %v3895_v9 = vmul.f32 %v3879_v49, %v3879_v49  ;;  %v3919_v3 = vsub.f32 %v6346_v16, %v3879_v49 }
 0x54d   : > { %v3904_v17 = vsub.f32 %v3888_v19, %v3896_v63  ;;  %v3857_v0 = vpop.xlane.xlu0 %3856 }
 0x54e   : > { %v3887_v57 = vmul.f32 0.03125, %v3857_v0  ;;  %v3834_v48 = vpop.xlane.xlu1 %3833 }
 0x54f   : > { %v3912_v52 = vmax.f32 %v3904_v17, 0.0  ;;  %v3882_v60 = vmul.f32 0.03125, %v3834_v48 }
 0x550   : > { %v3903_v22 = vsub.f32 %v3887_v57, %v3895_v9 }
 0x551   : > { %5116 = vrsqrt.f32 %v3912_v52  ;;  %v3831_v53 = vpop.xlane.xlu0 %3830  ;;  %v3898_v28 = vmul.f32 %v3882_v60, %v3882_v60  ;;  %v3922_v27 = vsub.f32 %v6357_v44, %v3882_v60 }
 0x552   : > { %v3911_v1 = vmax.f32 %v3903_v22, 0.0  ;;  %v6407_v30 = vmul.f32 0.03125, %v3831_v53  ;;  %v3866_v24 = vpop.xlane.xlu1 %3865 }
 0x553   : > { %v3890_v41 = vmul.f32 0.03125, %v3866_v24 }
 0x554   : > { %5118 = vrsqrt.f32 %v3911_v1  ;;  %v3897_v42 = vmul.f32 %v6407_v30, %v6407_v30  ;;  %v3921_v48 = vsub.f32 %v6362_v45, %v6407_v30 }
 0x555   : > { %v3906_v40 = vsub.f32 %v3890_v41, %v3898_v28  ;;  %v3863_v31 = vpop.xlane.xlu0 %3862 }
 0x556   : > { %v3889_v54 = vmul.f32 0.03125, %v3863_v31  ;;  %v3840_v4 = vpop.xlane.xlu1 %3839 }
 0x557   : > { %v3914_v21 = vmax.f32 %v3906_v40, 0.0  ;;  %v3884_v50 = vmul.f32 0.03125, %v3840_v4 }
 0x558   : > { %v3905_v55 = vsub.f32 %v3889_v54, %v3897_v42 }
 0x559   : > { %5120 = vrsqrt.f32 %v3914_v21  ;;  %v3837_v34 = vpop.xlane.xlu0 %3836  ;;  %v3900_v18 = vmul.f32 %v3884_v50, %v3884_v50  ;;  %v3924_v28 = vsub.f32 %v6375_v6, %v3884_v50 }
 0x55a   : > { %v3913_v7 = vmax.f32 %v3905_v55, 0.0  ;;  %v3883_v37 = vmul.f32 0.03125, %v3837_v34  ;;  %v3872_v2 = vpop.xlane.xlu1 %3871 }
 0x55b   : > { %v3892_v43 = vmul.f32 0.03125, %v3872_v2 }
 0x55c   : > { %5122 = vrsqrt.f32 %v3913_v7  ;;  %v3899_v23 = vmul.f32 %v3883_v37, %v3883_v37  ;;  %v3923_v40 = vsub.f32 %v6379_v46, %v3883_v37 }
 0x55d   : > { %v3908_v36 = vsub.f32 %v3892_v43, %v3900_v18  ;;  %v3869_v61 = vpop.xlane.xlu0 %3868 }
 0x55e   : > { %v5117_v47 = vpop.eup %5116  ;;  %v3891_v35 = vmul.f32 0.03125, %v3869_v61  ;;  %v3846_v58 = vpop.xlane.xlu1 %3845 }
 0x55f   : > { %v3944_v20 = vmul.f32 %v5117_v47, %v3920_v29  ;;  %v3916_v39 = vmax.f32 %v3908_v36, 0.0  ;;  %v3886_v5 = vmul.f32 0.03125, %v3846_v58 }
 0x560   : > { %v3907_v25 = vsub.f32 %v3891_v35, %v3899_v23 }
 0x561   : > { %v5119_v8 = vpop.eup %5118  ;;  %v3956_v33 = vmul.f32 %v6327_v12, %v3944_v20  ;;  %5124 = vrsqrt.f32 %v3916_v39  ;;  %v3843_v15 = vpop.xlane.xlu0 %3842  ;;  %v3902_v14 = vmul.f32 %v3886_v5, %v3886_v5  ;;  %v3926_v6 = vsub.f32 %v6391_v62, %v3886_v5 }
 0x562   : > { %v3943_v32 = vmul.f32 %v5119_v8, %v3919_v3  ;;  %v3915_v10 = vmax.f32 %v3907_v25, 0.0  ;;  %v3885_v59 = vmul.f32 0.03125, %v3843_v15  ;;  %v3878_v38 = vpop.xlane.xlu1 %3877 }
 0x563   : > { %v3968_v16 = vadd.f32 %v6329_v26, %v3956_v33  ;;  %v3894_v11 = vmul.f32 0.03125, %v3878_v38 }
 0x564   : > { %v3955_v51 = vmul.f32 %v6327_v12, %v3943_v32  ;;  %5126 = vrsqrt.f32 %v3915_v10  ;;  %v3901_v17 = vmul.f32 %v3885_v59, %v3885_v59  ;;  %v3925_v46 = vsub.f32 %v6395_v56, %v3885_v59 }
 0x565   : > { %3976 = vst.msk [vmem:[%s6419_s30 + $0x8] sm:$0xff] %vm344_vm0, %v3968_v16  ;;  %v3910_v49 = vsub.f32 %v3894_v11, %v3902_v14  ;;  %v3875_v13 = vpop.xlane.xlu0 %3874 }
 0x566   : > { %v5121_v63 = vpop.eup %5120  ;;  %v3967_v19 = vadd.f32 %v6329_v26, %v3955_v51  ;;  %v3893_v0 = vmul.f32 0.03125, %v3875_v13 }
 0x567   : > { %v3946_v9 = vmul.f32 %v5121_v63, %v3922_v27  ;;  %v3918_v57 = vmax.f32 %v3910_v49, 0.0 }
 0x568   : > { %3975 = vst.msk [vmem:[%s6419_s30] sm:$0xff] %vm344_vm0, %v3967_v19  ;;  %v3909_v52 = vsub.f32 %v3893_v0, %v3901_v17 }
 0x569   : > { %v5123_v22 = vpop.eup %5122  ;;  %v3958_v44 = vmul.f32 %v6327_v12, %v3946_v9  ;;  %5128 = vrsqrt.f32 %v3918_v57 }
 0x56a   : > { %v3945_v60 = vmul.f32 %v5123_v22, %v3921_v48  ;;  %v3917_v53 = vmax.f32 %v3909_v52, 0.0 }
 0x56b   : > { %v3970_v1 = vadd.f32 %v6329_v26, %v3958_v44 }
 0x56c   : > { %v3957_v24 = vmul.f32 %v6327_v12, %v3945_v60  ;;  %5130 = vrsqrt.f32 %v3917_v53 }
 0x56d   : > { %3978 = vst.msk [vmem:[%s6419_s30 + $0x18] sm:$0xff] %vm344_vm0, %v3970_v1 }
 0x56e   : > { %v5125_v41 = vpop.eup %5124  ;;  %v3969_v45 = vadd.f32 %v6329_v26, %v3957_v24 }
 0x56f   : > { %v3948_v30 = vmul.f32 %v5125_v41, %v3924_v28 }
 0x570   : > { %3977 = vst.msk [vmem:[%s6419_s30 + $0x10] sm:$0xff] %vm344_vm0, %v3969_v45 }
 0x571   : > { %v5127_v31 = vpop.eup %5126  ;;  %v3960_v42 = vmul.f32 %v6327_v12, %v3948_v30 }
 0x572   : > { %v3947_v54 = vmul.f32 %v5127_v31, %v3923_v40 }
 0x573   : > { %v3972_v4 = vadd.f32 %v6329_v26, %v3960_v42 }
 0x574   : > { %v3959_v21 = vmul.f32 %v6327_v12, %v3947_v54 }
 0x575   : > { %3980 = vst.msk [vmem:[%s6419_s30 + $0x28] sm:$0xff] %vm344_vm0, %v3972_v4 }
 0x576   : > { %v5129_v50 = vpop.eup %5128  ;;  %v3971_v55 = vadd.f32 %v6329_v26, %v3959_v21 }
 0x577   : > { %v3950_v34 = vmul.f32 %v5129_v50, %v3926_v6 }
 0x578   : > { %3979 = vst.msk [vmem:[%s6419_s30 + $0x20] sm:$0xff] %vm344_vm0, %v3971_v55 }
 0x579   : > { %v5131_v7 = vpop.eup %5130  ;;  %v3962_v37 = vmul.f32 %v6327_v12, %v3950_v34 }
 0x57a   : > { %v3949_v2 = vmul.f32 %v5131_v7, %v3925_v46 }
 0x57b   : > { %v3974_v18 = vadd.f32 %v6329_v26, %v3962_v37 }
 0x57c   : > { %v3961_v43 = vmul.f32 %v6327_v12, %v3949_v2 }
 0x57d   : > { %3982 = vst.msk [vmem:[%s6419_s30 + $0x38] sm:$0xff] %vm344_vm0, %v3974_v18 }
 0x57e   : > { %v3973_v62 = vadd.f32 %v6329_v26, %v3961_v43 }
 0x580   : > { %3981 = vst.msk [vmem:[%s6419_s30 + $0x30] sm:$0xff] %vm344_vm0, %v3973_v62 }
 0x581 PF: > { %s16_s23 = sadd.s32 1, %s5162_s23   ;;  %s6584_s21 = smov %s5158_s22 }
 0x582   : > { %p13_p5 = scmp.ge.s32.totalorder %s16_s23, 4   ;;  %s6585_s22 = smov %s6587_s24 }
 0x584   :  { %15 = sbr.rel (!%p13_p5) target bundleno = 2 (0x2), region = 80 }

</bundles_post_ra>
